<compile_context>
chip_gen: v5e
topology: v5e:2x2
jax: 0.10.0
libtpu: 0.0.40
codegen_flags: <defaults>
</compile_context>

<pallas_src>
import jax
import jax.numpy as jnp
from jax.experimental import pallas as pl
from jax.experimental.pallas import tpu as pltpu


LANE = 128        # pad E / H / V to multiples of the 128-lane vreg width
SUBLANE = 8
MAX_B_BLK = 128   # batch rows per grid step (128 saturates v5e MXU rows)
TILE_V = 128      # vocab tile for fc_out / prediction writeback


def _round_up(x, m):
    return (x + m - 1) // m * m


# ----------------------------- Pallas kernel --------------------------------

def _make_decoder_kernel(n_layers, b_blk, h_pad):
    """Fused decoder step: embedding gather + stacked LSTM + one fc vocab tile."""

    def kernel(*refs):
        ids_ref = refs[0]                              # (Bp,) int32 in SMEM
        emb_hbm = refs[1]                              # (V_pad, E_pad) f32 in HBM
        h0_ref, c0_ref = refs[2], refs[3]              # (L, B_blk, H_pad) f32
        layer_refs = refs[4:4 + 3 * n_layers]          # (w_ih_t, w_hh_t, b) per layer
        wfc_ref = refs[4 + 3 * n_layers]               # (H_pad, TILE_V) bf16
        bfc_ref = refs[5 + 3 * n_layers]               # (1, TILE_V) f32
        pred_ref, hN_ref, cN_ref = refs[6 + 3 * n_layers:9 + 3 * n_layers]
        x_sc, h_sc, sem = refs[9 + 3 * n_layers:]      # VMEM scratch + DMA sems

        i = pl.program_id(0)   # batch block
        j = pl.program_id(1)   # vocab tile
        H = h_pad

        # ---- once per batch block (first vocab tile): gather + LSTM ----------
        @pl.when(j == 0)
        def _():
            # Embedding lookup as a row-gather DMA from HBM (exact f32 rows,
            # VMEM footprint O(B*E), no one-hot matmul).
            base = i * b_blk
            copies = []
            for b in range(b_blk):
                tok = ids_ref[base + b]
                cp = pltpu.make_async_copy(
                    emb_hbm.at[pl.ds(tok, 1), :],
                    x_sc.at[pl.ds(b, 1), :],
                    sem.at[b])
                cp.start()
                copies.append(cp)
            for cp in copies:
                cp.wait()
            # dropout(embedded): identity at inference.

            x = x_sc[...]                                            # (B, E_pad) f32
            for l in range(n_layers):
                w_ih_ref = layer_refs[3 * l]        # (in_pad, 4*H_pad) bf16
                w_hh_ref = layer_refs[3 * l + 1]    # (H_pad,  4*H_pad) bf16
                b_ref = layer_refs[3 * l + 2]       # (1, 4*H_pad) f32
                h_prev = h0_ref[l]                  # (B, H_pad) f32
                c_prev = c0_ref[l]

                # Two accumulating MXU dots (no lane-direction concat); bf16
                # operands, f32 accumulation; gate math stays f32.
                gates = (
                    jnp.dot(x.astype(jnp.bfloat16), w_ih_ref[...],
                            preferred_element_type=jnp.float32)
                    + jnp.dot(h_prev.astype(jnp.bfloat16), w_hh_ref[...],
                              preferred_element_type=jnp.float32)
                    + b_ref[...])                                    # (B, 4*H_pad)

                # PyTorch gate order i, f, g, o; each block is 128-lane aligned.
                i_g = jax.nn.sigmoid(gates[:, 0 * H:1 * H])
                f_g = jax.nn.sigmoid(gates[:, 1 * H:2 * H])
                g_g = jnp.tanh(gates[:, 2 * H:3 * H])
                o_g = jax.nn.sigmoid(gates[:, 3 * H:4 * H])

                c_new = f_g * c_prev + i_g * g_g
                h_new = o_g * jnp.tanh(c_new)

                hN_ref[l] = h_new.astype(hN_ref.dtype)
                cN_ref[l] = c_new.astype(cN_ref.dtype)
                x = h_new   # inter-layer dropout: identity at inference

            h_sc[...] = x   # keep final hidden resident across vocab tiles

        # ---- fc_out: one lane-dense vocab tile per grid step ------------------
        pred_ref[...] = (
            jnp.dot(h_sc[...].astype(jnp.bfloat16), wfc_ref[...],
                    preferred_element_type=jnp.float32)
            + bfc_ref[...]).astype(pred_ref.dtype)

    return kernel


# ------------------------------ wrapper --------------------------------------

def decoder_step_pallas(params, tokens, hidden, cell):
    """One decoder step.

    tokens: (B,) int32   hidden/cell: (L, B, H) f32
    returns (prediction (B, V), hidden (L, B, H), cell (L, B, H))
    """
    L, B, H = hidden.shape
    V = params["output_dim"]
    H_pad, E_pad, V_pad = params["H_pad"], params["E_pad"], params["V_pad"]

    # Batch blocking: a single block when it fits (no grid overhead for small
    # decode batches), otherwise 128-row blocks sharded across cores.
    bp8 = _round_up(max(B, 1), SUBLANE)
    b_blk = bp8 if bp8 <= MAX_B_BLK else MAX_B_BLK
    Bp = _round_up(B, b_blk)
    n_b_blk = Bp // b_blk
    n_v_blk = V_pad // TILE_V
    pad_b = Bp - B

    ids = jnp.pad(tokens.astype(jnp.int32), (0, pad_b))
    h0 = jnp.pad(hidden, ((0, 0), (0, pad_b), (0, H_pad - H)))
    c0 = jnp.pad(cell, ((0, 0), (0, pad_b), (0, H_pad - H)))

    inputs = [params["embedding"], h0, c0]
    in_specs = [
        pl.BlockSpec(memory_space=pl.ANY),                               # emb in HBM
        pl.BlockSpec((L, b_blk, H_pad), lambda i, j, ids: (0, i, 0)),    # h_0
        pl.BlockSpec((L, b_blk, H_pad), lambda i, j, ids: (0, i, 0)),    # c_0
    ]
    for lp in params["lstm"]:
        inputs += [lp["w_ih_t"], lp["w_hh_t"], lp["b"]]
        in_specs += [
            pl.BlockSpec(lp["w_ih_t"].shape, lambda i, j, ids: (0, 0)),
            pl.BlockSpec(lp["w_hh_t"].shape, lambda i, j, ids: (0, 0)),
            pl.BlockSpec(lp["b"].shape, lambda i, j, ids: (0, 0)),
        ]
    inputs += [params["fc_w_t"], params["fc_b"]]
    in_specs += [
        pl.BlockSpec((H_pad, TILE_V), lambda i, j, ids: (0, j)),         # fc weight tile
        pl.BlockSpec((1, TILE_V), lambda i, j, ids: (0, j)),             # fc bias tile
    ]

    out_shape = (
        jax.ShapeDtypeStruct((Bp, V_pad), jnp.float32),
        jax.ShapeDtypeStruct((L, Bp, H_pad), jnp.float32),
        jax.ShapeDtypeStruct((L, Bp, H_pad), jnp.float32),
    )
    out_specs = [
        pl.BlockSpec((b_blk, TILE_V), lambda i, j, ids: (i, j)),
        pl.BlockSpec((L, b_blk, H_pad), lambda i, j, ids: (0, i, 0)),
        pl.BlockSpec((L, b_blk, H_pad), lambda i, j, ids: (0, i, 0)),
    ]

    grid_spec = pltpu.PrefetchScalarGridSpec(
        num_scalar_prefetch=1,
        grid=(n_b_blk, n_v_blk),
        in_specs=in_specs,
        out_specs=out_specs,
        scratch_shapes=[
            pltpu.VMEM((b_blk, E_pad), jnp.float32),   # gathered embedding rows
            pltpu.VMEM((b_blk, H_pad), jnp.float32),   # final hidden, reused per vocab tile
            pltpu.SemaphoreType.DMA((b_blk,)),
        ],
    )

    pred, h_new, c_new = pl.pallas_call(
        _make_decoder_kernel(L, b_blk, H_pad),
        out_shape=out_shape,
        grid_spec=grid_spec,
        compiler_params=pltpu.CompilerParams(
            dimension_semantics=("parallel", "arbitrary"),
            vmem_limit_bytes=32 * 1024 * 1024,
        ),
    )(ids, *inputs)

    return pred[:B, :V], h_new[:, :B, :H], c_new[:, :B, :H]


# ------------------------------ parameters -----------------------------------

def init_decoder_params(key, output_dim, emb_dim, hid_dim, n_layers):
    """Synthetic params (nn.Embedding + nn.LSTM + nn.Linear shapes), pre-packed:
    transposed, padded to 128-lane boundaries, gate blocks 128-aligned, bf16 MXU
    operands.  Raw f32 copies kept under "ref" for the pure-JAX reference."""
    V_pad = _round_up(output_dim, LANE)
    E_pad = _round_up(emb_dim, LANE)
    H_pad = _round_up(hid_dim, LANE)

    keys = jax.random.split(key, 3 + 4 * n_layers)
    emb = jax.random.normal(keys[0], (output_dim, emb_dim), dtype=jnp.float32)
    k = 1.0 / float(hid_dim) ** 0.5

    ref_layers, packed_layers = [], []
    for l in range(n_layers):
        in_sz = emb_dim if l == 0 else hid_dim
        in_pad = E_pad if l == 0 else H_pad
        kw = keys[1 + 4 * l: 1 + 4 * (l + 1)]
        w_ih = jax.random.uniform(kw[0], (4 * hid_dim, in_sz), jnp.float32, -k, k)
        w_hh = jax.random.uniform(kw[1], (4 * hid_dim, hid_dim), jnp.float32, -k, k)
        b_ih = jax.random.uniform(kw[2], (4 * hid_dim,), jnp.float32, -k, k)
        b_hh = jax.random.uniform(kw[3], (4 * hid_dim,), jnp.float32, -k, k)
        ref_layers.append(dict(w_ih=w_ih, w_hh=w_hh, b_ih=b_ih, b_hh=b_hh))

        w_ih_t = jnp.zeros((in_pad, 4 * H_pad), jnp.float32)
        w_hh_t = jnp.zeros((H_pad, 4 * H_pad), jnp.float32)
        bias = jnp.zeros((1, 4 * H_pad), jnp.float32)
        for g in range(4):
            w_ih_t = w_ih_t.at[:in_sz, g * H_pad:g * H_pad + hid_dim].set(
                w_ih[g * hid_dim:(g + 1) * hid_dim, :].T)
            w_hh_t = w_hh_t.at[:hid_dim, g * H_pad:g * H_pad + hid_dim].set(
                w_hh[g * hid_dim:(g + 1) * hid_dim, :].T)
            bias = bias.at[0, g * H_pad:g * H_pad + hid_dim].set(
                b_ih[g * hid_dim:(g + 1) * hid_dim]
                + b_hh[g * hid_dim:(g + 1) * hid_dim])
        packed_layers.append(dict(
            w_ih_t=w_ih_t.astype(jnp.bfloat16),
            w_hh_t=w_hh_t.astype(jnp.bfloat16),
            b=bias))

    w_fc = jax.random.uniform(keys[-2], (output_dim, hid_dim), jnp.float32, -k, k)
    b_fc = jax.random.uniform(keys[-1], (output_dim,), jnp.float32, -k, k)

    fc_w_t = jnp.zeros((H_pad, V_pad), jnp.float32).at[:hid_dim, :output_dim].set(w_fc.T)
    fc_b = jnp.zeros((1, V_pad), jnp.float32).at[0, :output_dim].set(b_fc)
    emb_pad = jnp.zeros((V_pad, E_pad), jnp.float32).at[:output_dim, :emb_dim].set(emb)

    return dict(
        embedding=emb_pad,                       # f32, HBM-resident, row-gathered
        lstm=packed_layers,
        fc_w_t=fc_w_t.astype(jnp.bfloat16),
        fc_b=fc_b,
        output_dim=output_dim, emb_dim=emb_dim, hid_dim=hid_dim,
        H_pad=H_pad, E_pad=E_pad, V_pad=V_pad,
        ref=dict(embedding=emb, lstm=ref_layers, fc_w=w_fc, fc_b=b_fc),
    )


# --------------------------- pure-JAX reference -------------------------------

def decoder_step_ref(params, tokens, hidden, cell):
    r = params["ref"]
    hp = jax.lax.Precision.HIGHEST
    x = jnp.take(r["embedding"], tokens, axis=0)           # (B, E)
    H = hidden.shape[-1]
    hs, cs = [], []
    for l, lp in enumerate(r["lstm"]):
        gates = (jnp.dot(x, lp["w_ih"].T, precision=hp)
                 + jnp.dot(hidden[l], lp["w_hh"].T, precision=hp)
                 + lp["b_ih"] + lp["b_hh"])
        i = jax.nn.sigmoid(gates[:, 0 * H:1 * H])
        f = jax.nn.sigmoid(gates[:, 1 * H:2 * H])
        g = jnp.tanh(gates[:, 2 * H:3 * H])
        o = jax.nn.sigmoid(gates[:, 3 * H:4 * H])
        c_new = f * cell[l] + i * g
        h_new = o * jnp.tanh(c_new)
        hs.append(h_new)
        cs.append(c_new)
        x = h_new
    pred = jnp.dot(x, r["fc_w"].T, precision=hp) + r["fc_b"]
    return pred, jnp.stack(hs, axis=0), jnp.stack(cs, axis=0)


# ----------------------------------- main -------------------------------------

if __name__ == "__main__":
    OUTPUT_DIM = 50      # vocab size
    EMB_DIM = 32
    HID_DIM = 32
    N_LAYERS = 2
    BATCH = 2

    key = jax.random.PRNGKey(0)
    pkey, tkey, hkey, ckey = jax.random.split(key, 4)
    params = init_decoder_params(pkey, OUTPUT_DIM, EMB_DIM, HID_DIM, N_LAYERS)

    tokens = jax.random.randint(tkey, (BATCH,), 0, OUTPUT_DIM, dtype=jnp.int32)
    hidden0 = jax.random.normal(hkey, (N_LAYERS, BATCH, HID_DIM), dtype=jnp.float32)
    cell0 = jax.random.normal(ckey, (N_LAYERS, BATCH, HID_DIM), dtype=jnp.float32)

    pred, hidden, cell = decoder_step_pallas(params, tokens, hidden0, cell0)
    pred = jax.block_until_ready(pred)
    hidden = jax.block_until_ready(hidden)
    cell = jax.block_until_ready(cell)

    assert pred.shape == (BATCH, OUTPUT_DIM)
    assert hidden.shape == (N_LAYERS, BATCH, HID_DIM)
    assert cell.shape == (N_LAYERS, BATCH, HID_DIM)

    p_ref, h_ref, c_ref = decoder_step_ref(params, tokens, hidden0, cell0)
    # bf16 MXU operands (f32 accumulation) vs. a full-f32 reference.
    assert jnp.allclose(pred, p_ref, atol=2e-2, rtol=2e-2)
    assert jnp.allclose(hidden, h_ref, atol=2e-2, rtol=2e-2)
    assert jnp.allclose(cell, c_ref, atol=2e-2, rtol=2e-2)

    print("KERNEL_OK")
</pallas_src>

<mosaic_0001>
module attributes {stable_mosaic.version = 11 : i64} {
  func.func @kernel(%arg0: i32, %arg1: i32, %arg2: memref<8xi32, #tpu.memory_space<smem>>, %arg3: memref<128x128xf32, #tpu.memory_space<any>>, %arg4: memref<2x8x128xf32, #tpu.memory_space<vmem>>, %arg5: memref<2x8x128xf32, #tpu.memory_space<vmem>>, %arg6: memref<128x512xbf16, #tpu.memory_space<vmem>>, %arg7: memref<128x512xbf16, #tpu.memory_space<vmem>>, %arg8: memref<1x512xf32, #tpu.memory_space<vmem>>, %arg9: memref<128x512xbf16, #tpu.memory_space<vmem>>, %arg10: memref<128x512xbf16, #tpu.memory_space<vmem>>, %arg11: memref<1x512xf32, #tpu.memory_space<vmem>>, %arg12: memref<128x128xbf16, #tpu.memory_space<vmem>>, %arg13: memref<1x128xf32, #tpu.memory_space<vmem>>, %arg14: memref<8x128xf32, #tpu.memory_space<vmem>>, %arg15: memref<2x8x128xf32, #tpu.memory_space<vmem>>, %arg16: memref<2x8x128xf32, #tpu.memory_space<vmem>>, %arg17: memref<8x128xf32, #tpu.memory_space<vmem>>, %arg18: memref<8x128xf32, #tpu.memory_space<vmem>>, %arg19: memref<8x!tpu.dma_semaphore, #tpu.memory_space<semaphore_mem>>) attributes {dimension_semantics = [#tpu.dimension_semantics<parallel>, #tpu.dimension_semantics<arbitrary>], iteration_bounds = array<i64: 1, 1>, scalar_prefetch = 1 : i64, scratch_operands = 3 : i64, tpu.core_type = #tpu.core_type<tc>, window_params = [{}, {transform_indices = @transform_1, window_bounds = array<i64: 2, 8, 128>}, {transform_indices = @transform_2, window_bounds = array<i64: 2, 8, 128>}, {pipeline_mode = #tpu.pipeline_mode<synchronous>, transform_indices = @transform_3, window_bounds = array<i64: 128, 512>}, {pipeline_mode = #tpu.pipeline_mode<synchronous>, transform_indices = @transform_4, window_bounds = array<i64: 128, 512>}, {pipeline_mode = #tpu.pipeline_mode<synchronous>, transform_indices = @transform_5, window_bounds = array<i64: 1, 512>}, {pipeline_mode = #tpu.pipeline_mode<synchronous>, transform_indices = @transform_6, window_bounds = array<i64: 128, 512>}, {pipeline_mode = #tpu.pipeline_mode<synchronous>, transform_indices = @transform_7, window_bounds = array<i64: 128, 512>}, {pipeline_mode = #tpu.pipeline_mode<synchronous>, transform_indices = @transform_8, window_bounds = array<i64: 1, 512>}, {transform_indices = @transform_9, window_bounds = array<i64: 128, 128>}, {transform_indices = @transform_10, window_bounds = array<i64: 1, 128>}, {transform_indices = @transform_11, window_bounds = array<i64: 8, 128>}, {transform_indices = @transform_12, window_bounds = array<i64: 2, 8, 128>}, {transform_indices = @transform_13, window_bounds = array<i64: 2, 8, 128>}]} {
    %c0_i32 = arith.constant 0 : i32
    %0 = arith.cmpi eq, %arg1, %c0_i32 : i32
    %1 = arith.extui %0 : i1 to i32
    %c0_i32_0 = arith.constant 0 : i32
    %2 = arith.cmpi ne, %1, %c0_i32_0 : i32
    scf.if %2 {
      %c8_i32 = arith.constant 8 : i32
      %11 = arith.muli %arg0, %c8_i32 : i32
      %c0_i32_8 = arith.constant 0 : i32
      %12 = arith.addi %11, %c0_i32_8 : i32
      %13 = arith.index_cast %12 : i32 to index
      %14 = memref.load %arg2[%13] : memref<8xi32, #tpu.memory_space<smem>>
      %c0_i32_9 = arith.constant 0 : i32
      %c0_i32_10 = arith.constant 0 : i32
      %15 = tpu.memref_slice %arg3[%14, %c0_i32_10] : memref<128x128xf32, #tpu.memory_space<any>> -> memref<1x128xf32, #tpu.memory_space<any>>
      %c0_i32_11 = arith.constant 0 : i32
      %c0_i32_12 = arith.constant 0 : i32
      %16 = tpu.memref_slice %arg17[%c0_i32_11, %c0_i32_12] : memref<8x128xf32, #tpu.memory_space<vmem>> -> memref<1x128xf32, #tpu.memory_space<vmem>>
      %17 = tpu.memref_slice %arg19[%c0_i32_9] : memref<8x!tpu.dma_semaphore, #tpu.memory_space<semaphore_mem>> -> memref<1x!tpu.dma_semaphore, #tpu.memory_space<semaphore_mem>>
      %18 = tpu.memref_squeeze %17 : memref<1x!tpu.dma_semaphore, #tpu.memory_space<semaphore_mem>> -> memref<!tpu.dma_semaphore, #tpu.memory_space<semaphore_mem>>
      tpu.enqueue_dma source(%15 : memref<1x128xf32, #tpu.memory_space<any>>) target(%16 : memref<1x128xf32, #tpu.memory_space<vmem>>) target_semaphore(%18 : memref<!tpu.dma_semaphore, #tpu.memory_space<semaphore_mem>>)
      %c1_i32 = arith.constant 1 : i32
      %19 = arith.addi %11, %c1_i32 : i32
      %20 = arith.index_cast %19 : i32 to index
      %21 = memref.load %arg2[%20] : memref<8xi32, #tpu.memory_space<smem>>
      %c1_i32_13 = arith.constant 1 : i32
      %c0_i32_14 = arith.constant 0 : i32
      %22 = tpu.memref_slice %arg3[%21, %c0_i32_14] : memref<128x128xf32, #tpu.memory_space<any>> -> memref<1x128xf32, #tpu.memory_space<any>>
      %c1_i32_15 = arith.constant 1 : i32
      %c0_i32_16 = arith.constant 0 : i32
      %23 = tpu.memref_slice %arg17[%c1_i32_15, %c0_i32_16] : memref<8x128xf32, #tpu.memory_space<vmem>> -> memref<1x128xf32, #tpu.memory_space<vmem>>
      %24 = tpu.memref_slice %arg19[%c1_i32_13] : memref<8x!tpu.dma_semaphore, #tpu.memory_space<semaphore_mem>> -> memref<1x!tpu.dma_semaphore, #tpu.memory_space<semaphore_mem>>
      %25 = tpu.memref_squeeze %24 : memref<1x!tpu.dma_semaphore, #tpu.memory_space<semaphore_mem>> -> memref<!tpu.dma_semaphore, #tpu.memory_space<semaphore_mem>>
      tpu.enqueue_dma source(%22 : memref<1x128xf32, #tpu.memory_space<any>>) target(%23 : memref<1x128xf32, #tpu.memory_space<vmem>>) target_semaphore(%25 : memref<!tpu.dma_semaphore, #tpu.memory_space<semaphore_mem>>)
      %c2_i32 = arith.constant 2 : i32
      %26 = arith.addi %11, %c2_i32 : i32
      %27 = arith.index_cast %26 : i32 to index
      %28 = memref.load %arg2[%27] : memref<8xi32, #tpu.memory_space<smem>>
      %c2_i32_17 = arith.constant 2 : i32
      %c0_i32_18 = arith.constant 0 : i32
      %29 = tpu.memref_slice %arg3[%28, %c0_i32_18] : memref<128x128xf32, #tpu.memory_space<any>> -> memref<1x128xf32, #tpu.memory_space<any>>
      %c2_i32_19 = arith.constant 2 : i32
      %c0_i32_20 = arith.constant 0 : i32
      %30 = tpu.memref_slice %arg17[%c2_i32_19, %c0_i32_20] : memref<8x128xf32, #tpu.memory_space<vmem>> -> memref<1x128xf32, #tpu.memory_space<vmem>>
      %31 = tpu.memref_slice %arg19[%c2_i32_17] : memref<8x!tpu.dma_semaphore, #tpu.memory_space<semaphore_mem>> -> memref<1x!tpu.dma_semaphore, #tpu.memory_space<semaphore_mem>>
      %32 = tpu.memref_squeeze %31 : memref<1x!tpu.dma_semaphore, #tpu.memory_space<semaphore_mem>> -> memref<!tpu.dma_semaphore, #tpu.memory_space<semaphore_mem>>
      tpu.enqueue_dma source(%29 : memref<1x128xf32, #tpu.memory_space<any>>) target(%30 : memref<1x128xf32, #tpu.memory_space<vmem>>) target_semaphore(%32 : memref<!tpu.dma_semaphore, #tpu.memory_space<semaphore_mem>>)
      %c3_i32 = arith.constant 3 : i32
      %33 = arith.addi %11, %c3_i32 : i32
      %34 = arith.index_cast %33 : i32 to index
      %35 = memref.load %arg2[%34] : memref<8xi32, #tpu.memory_space<smem>>
      %c3_i32_21 = arith.constant 3 : i32
      %c0_i32_22 = arith.constant 0 : i32
      %36 = tpu.memref_slice %arg3[%35, %c0_i32_22] : memref<128x128xf32, #tpu.memory_space<any>> -> memref<1x128xf32, #tpu.memory_space<any>>
      %c3_i32_23 = arith.constant 3 : i32
      %c0_i32_24 = arith.constant 0 : i32
      %37 = tpu.memref_slice %arg17[%c3_i32_23, %c0_i32_24] : memref<8x128xf32, #tpu.memory_space<vmem>> -> memref<1x128xf32, #tpu.memory_space<vmem>>
      %38 = tpu.memref_slice %arg19[%c3_i32_21] : memref<8x!tpu.dma_semaphore, #tpu.memory_space<semaphore_mem>> -> memref<1x!tpu.dma_semaphore, #tpu.memory_space<semaphore_mem>>
      %39 = tpu.memref_squeeze %38 : memref<1x!tpu.dma_semaphore, #tpu.memory_space<semaphore_mem>> -> memref<!tpu.dma_semaphore, #tpu.memory_space<semaphore_mem>>
      tpu.enqueue_dma source(%36 : memref<1x128xf32, #tpu.memory_space<any>>) target(%37 : memref<1x128xf32, #tpu.memory_space<vmem>>) target_semaphore(%39 : memref<!tpu.dma_semaphore, #tpu.memory_space<semaphore_mem>>)
      %c4_i32 = arith.constant 4 : i32
      %40 = arith.addi %11, %c4_i32 : i32
      %41 = arith.index_cast %40 : i32 to index
      %42 = memref.load %arg2[%41] : memref<8xi32, #tpu.memory_space<smem>>
      %c4_i32_25 = arith.constant 4 : i32
      %c0_i32_26 = arith.constant 0 : i32
      %43 = tpu.memref_slice %arg3[%42, %c0_i32_26] : memref<128x128xf32, #tpu.memory_space<any>> -> memref<1x128xf32, #tpu.memory_space<any>>
      %c4_i32_27 = arith.constant 4 : i32
      %c0_i32_28 = arith.constant 0 : i32
      %44 = tpu.memref_slice %arg17[%c4_i32_27, %c0_i32_28] : memref<8x128xf32, #tpu.memory_space<vmem>> -> memref<1x128xf32, #tpu.memory_space<vmem>>
      %45 = tpu.memref_slice %arg19[%c4_i32_25] : memref<8x!tpu.dma_semaphore, #tpu.memory_space<semaphore_mem>> -> memref<1x!tpu.dma_semaphore, #tpu.memory_space<semaphore_mem>>
      %46 = tpu.memref_squeeze %45 : memref<1x!tpu.dma_semaphore, #tpu.memory_space<semaphore_mem>> -> memref<!tpu.dma_semaphore, #tpu.memory_space<semaphore_mem>>
      tpu.enqueue_dma source(%43 : memref<1x128xf32, #tpu.memory_space<any>>) target(%44 : memref<1x128xf32, #tpu.memory_space<vmem>>) target_semaphore(%46 : memref<!tpu.dma_semaphore, #tpu.memory_space<semaphore_mem>>)
      %c5_i32 = arith.constant 5 : i32
      %47 = arith.addi %11, %c5_i32 : i32
      %48 = arith.index_cast %47 : i32 to index
      %49 = memref.load %arg2[%48] : memref<8xi32, #tpu.memory_space<smem>>
      %c5_i32_29 = arith.constant 5 : i32
      %c0_i32_30 = arith.constant 0 : i32
      %50 = tpu.memref_slice %arg3[%49, %c0_i32_30] : memref<128x128xf32, #tpu.memory_space<any>> -> memref<1x128xf32, #tpu.memory_space<any>>
      %c5_i32_31 = arith.constant 5 : i32
      %c0_i32_32 = arith.constant 0 : i32
      %51 = tpu.memref_slice %arg17[%c5_i32_31, %c0_i32_32] : memref<8x128xf32, #tpu.memory_space<vmem>> -> memref<1x128xf32, #tpu.memory_space<vmem>>
      %52 = tpu.memref_slice %arg19[%c5_i32_29] : memref<8x!tpu.dma_semaphore, #tpu.memory_space<semaphore_mem>> -> memref<1x!tpu.dma_semaphore, #tpu.memory_space<semaphore_mem>>
      %53 = tpu.memref_squeeze %52 : memref<1x!tpu.dma_semaphore, #tpu.memory_space<semaphore_mem>> -> memref<!tpu.dma_semaphore, #tpu.memory_space<semaphore_mem>>
      tpu.enqueue_dma source(%50 : memref<1x128xf32, #tpu.memory_space<any>>) target(%51 : memref<1x128xf32, #tpu.memory_space<vmem>>) target_semaphore(%53 : memref<!tpu.dma_semaphore, #tpu.memory_space<semaphore_mem>>)
      %c6_i32 = arith.constant 6 : i32
      %54 = arith.addi %11, %c6_i32 : i32
      %55 = arith.index_cast %54 : i32 to index
      %56 = memref.load %arg2[%55] : memref<8xi32, #tpu.memory_space<smem>>
      %c6_i32_33 = arith.constant 6 : i32
      %c0_i32_34 = arith.constant 0 : i32
      %57 = tpu.memref_slice %arg3[%56, %c0_i32_34] : memref<128x128xf32, #tpu.memory_space<any>> -> memref<1x128xf32, #tpu.memory_space<any>>
      %c6_i32_35 = arith.constant 6 : i32
      %c0_i32_36 = arith.constant 0 : i32
      %58 = tpu.memref_slice %arg17[%c6_i32_35, %c0_i32_36] : memref<8x128xf32, #tpu.memory_space<vmem>> -> memref<1x128xf32, #tpu.memory_space<vmem>>
      %59 = tpu.memref_slice %arg19[%c6_i32_33] : memref<8x!tpu.dma_semaphore, #tpu.memory_space<semaphore_mem>> -> memref<1x!tpu.dma_semaphore, #tpu.memory_space<semaphore_mem>>
      %60 = tpu.memref_squeeze %59 : memref<1x!tpu.dma_semaphore, #tpu.memory_space<semaphore_mem>> -> memref<!tpu.dma_semaphore, #tpu.memory_space<semaphore_mem>>
      tpu.enqueue_dma source(%57 : memref<1x128xf32, #tpu.memory_space<any>>) target(%58 : memref<1x128xf32, #tpu.memory_space<vmem>>) target_semaphore(%60 : memref<!tpu.dma_semaphore, #tpu.memory_space<semaphore_mem>>)
      %c7_i32 = arith.constant 7 : i32
      %61 = arith.addi %11, %c7_i32 : i32
      %62 = arith.index_cast %61 : i32 to index
      %63 = memref.load %arg2[%62] : memref<8xi32, #tpu.memory_space<smem>>
      %c7_i32_37 = arith.constant 7 : i32
      %c0_i32_38 = arith.constant 0 : i32
      %64 = tpu.memref_slice %arg3[%63, %c0_i32_38] : memref<128x128xf32, #tpu.memory_space<any>> -> memref<1x128xf32, #tpu.memory_space<any>>
      %c7_i32_39 = arith.constant 7 : i32
      %c0_i32_40 = arith.constant 0 : i32
      %65 = tpu.memref_slice %arg17[%c7_i32_39, %c0_i32_40] : memref<8x128xf32, #tpu.memory_space<vmem>> -> memref<1x128xf32, #tpu.memory_space<vmem>>
      %66 = tpu.memref_slice %arg19[%c7_i32_37] : memref<8x!tpu.dma_semaphore, #tpu.memory_space<semaphore_mem>> -> memref<1x!tpu.dma_semaphore, #tpu.memory_space<semaphore_mem>>
      %67 = tpu.memref_squeeze %66 : memref<1x!tpu.dma_semaphore, #tpu.memory_space<semaphore_mem>> -> memref<!tpu.dma_semaphore, #tpu.memory_space<semaphore_mem>>
      tpu.enqueue_dma source(%64 : memref<1x128xf32, #tpu.memory_space<any>>) target(%65 : memref<1x128xf32, #tpu.memory_space<vmem>>) target_semaphore(%67 : memref<!tpu.dma_semaphore, #tpu.memory_space<semaphore_mem>>)
      %c0_i32_41 = arith.constant 0 : i32
      %c0_i32_42 = arith.constant 0 : i32
      %68 = tpu.memref_slice %arg3[%14, %c0_i32_42] : memref<128x128xf32, #tpu.memory_space<any>> -> memref<1x128xf32, #tpu.memory_space<any>>
      %c0_i32_43 = arith.constant 0 : i32
      %c0_i32_44 = arith.constant 0 : i32
      %69 = tpu.memref_slice %arg17[%c0_i32_43, %c0_i32_44] : memref<8x128xf32, #tpu.memory_space<vmem>> -> memref<1x128xf32, #tpu.memory_space<vmem>>
      %70 = tpu.memref_slice %arg19[%c0_i32_41] : memref<8x!tpu.dma_semaphore, #tpu.memory_space<semaphore_mem>> -> memref<1x!tpu.dma_semaphore, #tpu.memory_space<semaphore_mem>>
      %71 = tpu.memref_squeeze %70 : memref<1x!tpu.dma_semaphore, #tpu.memory_space<semaphore_mem>> -> memref<!tpu.dma_semaphore, #tpu.memory_space<semaphore_mem>>
      tpu.wait_dma2 semaphore(%71 : memref<!tpu.dma_semaphore, #tpu.memory_space<semaphore_mem>>) src(%68 : memref<1x128xf32, #tpu.memory_space<any>>) dst(%69 : memref<1x128xf32, #tpu.memory_space<vmem>>)
      %c1_i32_45 = arith.constant 1 : i32
      %c0_i32_46 = arith.constant 0 : i32
      %72 = tpu.memref_slice %arg3[%21, %c0_i32_46] : memref<128x128xf32, #tpu.memory_space<any>> -> memref<1x128xf32, #tpu.memory_space<any>>
      %c1_i32_47 = arith.constant 1 : i32
      %c0_i32_48 = arith.constant 0 : i32
      %73 = tpu.memref_slice %arg17[%c1_i32_47, %c0_i32_48] : memref<8x128xf32, #tpu.memory_space<vmem>> -> memref<1x128xf32, #tpu.memory_space<vmem>>
      %74 = tpu.memref_slice %arg19[%c1_i32_45] : memref<8x!tpu.dma_semaphore, #tpu.memory_space<semaphore_mem>> -> memref<1x!tpu.dma_semaphore, #tpu.memory_space<semaphore_mem>>
      %75 = tpu.memref_squeeze %74 : memref<1x!tpu.dma_semaphore, #tpu.memory_space<semaphore_mem>> -> memref<!tpu.dma_semaphore, #tpu.memory_space<semaphore_mem>>
      tpu.wait_dma2 semaphore(%75 : memref<!tpu.dma_semaphore, #tpu.memory_space<semaphore_mem>>) src(%72 : memref<1x128xf32, #tpu.memory_space<any>>) dst(%73 : memref<1x128xf32, #tpu.memory_space<vmem>>)
      %c2_i32_49 = arith.constant 2 : i32
      %c0_i32_50 = arith.constant 0 : i32
      %76 = tpu.memref_slice %arg3[%28, %c0_i32_50] : memref<128x128xf32, #tpu.memory_space<any>> -> memref<1x128xf32, #tpu.memory_space<any>>
      %c2_i32_51 = arith.constant 2 : i32
      %c0_i32_52 = arith.constant 0 : i32
      %77 = tpu.memref_slice %arg17[%c2_i32_51, %c0_i32_52] : memref<8x128xf32, #tpu.memory_space<vmem>> -> memref<1x128xf32, #tpu.memory_space<vmem>>
      %78 = tpu.memref_slice %arg19[%c2_i32_49] : memref<8x!tpu.dma_semaphore, #tpu.memory_space<semaphore_mem>> -> memref<1x!tpu.dma_semaphore, #tpu.memory_space<semaphore_mem>>
      %79 = tpu.memref_squeeze %78 : memref<1x!tpu.dma_semaphore, #tpu.memory_space<semaphore_mem>> -> memref<!tpu.dma_semaphore, #tpu.memory_space<semaphore_mem>>
      tpu.wait_dma2 semaphore(%79 : memref<!tpu.dma_semaphore, #tpu.memory_space<semaphore_mem>>) src(%76 : memref<1x128xf32, #tpu.memory_space<any>>) dst(%77 : memref<1x128xf32, #tpu.memory_space<vmem>>)
      %c3_i32_53 = arith.constant 3 : i32
      %c0_i32_54 = arith.constant 0 : i32
      %80 = tpu.memref_slice %arg3[%35, %c0_i32_54] : memref<128x128xf32, #tpu.memory_space<any>> -> memref<1x128xf32, #tpu.memory_space<any>>
      %c3_i32_55 = arith.constant 3 : i32
      %c0_i32_56 = arith.constant 0 : i32
      %81 = tpu.memref_slice %arg17[%c3_i32_55, %c0_i32_56] : memref<8x128xf32, #tpu.memory_space<vmem>> -> memref<1x128xf32, #tpu.memory_space<vmem>>
      %82 = tpu.memref_slice %arg19[%c3_i32_53] : memref<8x!tpu.dma_semaphore, #tpu.memory_space<semaphore_mem>> -> memref<1x!tpu.dma_semaphore, #tpu.memory_space<semaphore_mem>>
      %83 = tpu.memref_squeeze %82 : memref<1x!tpu.dma_semaphore, #tpu.memory_space<semaphore_mem>> -> memref<!tpu.dma_semaphore, #tpu.memory_space<semaphore_mem>>
      tpu.wait_dma2 semaphore(%83 : memref<!tpu.dma_semaphore, #tpu.memory_space<semaphore_mem>>) src(%80 : memref<1x128xf32, #tpu.memory_space<any>>) dst(%81 : memref<1x128xf32, #tpu.memory_space<vmem>>)
      %c4_i32_57 = arith.constant 4 : i32
      %c0_i32_58 = arith.constant 0 : i32
      %84 = tpu.memref_slice %arg3[%42, %c0_i32_58] : memref<128x128xf32, #tpu.memory_space<any>> -> memref<1x128xf32, #tpu.memory_space<any>>
      %c4_i32_59 = arith.constant 4 : i32
      %c0_i32_60 = arith.constant 0 : i32
      %85 = tpu.memref_slice %arg17[%c4_i32_59, %c0_i32_60] : memref<8x128xf32, #tpu.memory_space<vmem>> -> memref<1x128xf32, #tpu.memory_space<vmem>>
      %86 = tpu.memref_slice %arg19[%c4_i32_57] : memref<8x!tpu.dma_semaphore, #tpu.memory_space<semaphore_mem>> -> memref<1x!tpu.dma_semaphore, #tpu.memory_space<semaphore_mem>>
      %87 = tpu.memref_squeeze %86 : memref<1x!tpu.dma_semaphore, #tpu.memory_space<semaphore_mem>> -> memref<!tpu.dma_semaphore, #tpu.memory_space<semaphore_mem>>
      tpu.wait_dma2 semaphore(%87 : memref<!tpu.dma_semaphore, #tpu.memory_space<semaphore_mem>>) src(%84 : memref<1x128xf32, #tpu.memory_space<any>>) dst(%85 : memref<1x128xf32, #tpu.memory_space<vmem>>)
      %c5_i32_61 = arith.constant 5 : i32
      %c0_i32_62 = arith.constant 0 : i32
      %88 = tpu.memref_slice %arg3[%49, %c0_i32_62] : memref<128x128xf32, #tpu.memory_space<any>> -> memref<1x128xf32, #tpu.memory_space<any>>
      %c5_i32_63 = arith.constant 5 : i32
      %c0_i32_64 = arith.constant 0 : i32
      %89 = tpu.memref_slice %arg17[%c5_i32_63, %c0_i32_64] : memref<8x128xf32, #tpu.memory_space<vmem>> -> memref<1x128xf32, #tpu.memory_space<vmem>>
      %90 = tpu.memref_slice %arg19[%c5_i32_61] : memref<8x!tpu.dma_semaphore, #tpu.memory_space<semaphore_mem>> -> memref<1x!tpu.dma_semaphore, #tpu.memory_space<semaphore_mem>>
      %91 = tpu.memref_squeeze %90 : memref<1x!tpu.dma_semaphore, #tpu.memory_space<semaphore_mem>> -> memref<!tpu.dma_semaphore, #tpu.memory_space<semaphore_mem>>
      tpu.wait_dma2 semaphore(%91 : memref<!tpu.dma_semaphore, #tpu.memory_space<semaphore_mem>>) src(%88 : memref<1x128xf32, #tpu.memory_space<any>>) dst(%89 : memref<1x128xf32, #tpu.memory_space<vmem>>)
      %c6_i32_65 = arith.constant 6 : i32
      %c0_i32_66 = arith.constant 0 : i32
      %92 = tpu.memref_slice %arg3[%56, %c0_i32_66] : memref<128x128xf32, #tpu.memory_space<any>> -> memref<1x128xf32, #tpu.memory_space<any>>
      %c6_i32_67 = arith.constant 6 : i32
      %c0_i32_68 = arith.constant 0 : i32
      %93 = tpu.memref_slice %arg17[%c6_i32_67, %c0_i32_68] : memref<8x128xf32, #tpu.memory_space<vmem>> -> memref<1x128xf32, #tpu.memory_space<vmem>>
      %94 = tpu.memref_slice %arg19[%c6_i32_65] : memref<8x!tpu.dma_semaphore, #tpu.memory_space<semaphore_mem>> -> memref<1x!tpu.dma_semaphore, #tpu.memory_space<semaphore_mem>>
      %95 = tpu.memref_squeeze %94 : memref<1x!tpu.dma_semaphore, #tpu.memory_space<semaphore_mem>> -> memref<!tpu.dma_semaphore, #tpu.memory_space<semaphore_mem>>
      tpu.wait_dma2 semaphore(%95 : memref<!tpu.dma_semaphore, #tpu.memory_space<semaphore_mem>>) src(%92 : memref<1x128xf32, #tpu.memory_space<any>>) dst(%93 : memref<1x128xf32, #tpu.memory_space<vmem>>)
      %c7_i32_69 = arith.constant 7 : i32
      %c0_i32_70 = arith.constant 0 : i32
      %96 = tpu.memref_slice %arg3[%63, %c0_i32_70] : memref<128x128xf32, #tpu.memory_space<any>> -> memref<1x128xf32, #tpu.memory_space<any>>
      %c7_i32_71 = arith.constant 7 : i32
      %c0_i32_72 = arith.constant 0 : i32
      %97 = tpu.memref_slice %arg17[%c7_i32_71, %c0_i32_72] : memref<8x128xf32, #tpu.memory_space<vmem>> -> memref<1x128xf32, #tpu.memory_space<vmem>>
      %98 = tpu.memref_slice %arg19[%c7_i32_69] : memref<8x!tpu.dma_semaphore, #tpu.memory_space<semaphore_mem>> -> memref<1x!tpu.dma_semaphore, #tpu.memory_space<semaphore_mem>>
      %99 = tpu.memref_squeeze %98 : memref<1x!tpu.dma_semaphore, #tpu.memory_space<semaphore_mem>> -> memref<!tpu.dma_semaphore, #tpu.memory_space<semaphore_mem>>
      tpu.wait_dma2 semaphore(%99 : memref<!tpu.dma_semaphore, #tpu.memory_space<semaphore_mem>>) src(%96 : memref<1x128xf32, #tpu.memory_space<any>>) dst(%97 : memref<1x128xf32, #tpu.memory_space<vmem>>)
      %c0_73 = arith.constant 0 : index
      %c0_74 = arith.constant 0 : index
      %100 = vector.load %arg17[%c0_73, %c0_74] : memref<8x128xf32, #tpu.memory_space<vmem>>, vector<8x128xf32>
      %c0_75 = arith.constant 0 : index
      %c0_76 = arith.constant 0 : index
      %c0_77 = arith.constant 0 : index
      %101 = vector.load %arg4[%c0_75, %c0_76, %c0_77] : memref<2x8x128xf32, #tpu.memory_space<vmem>>, vector<1x8x128xf32>
      %102 = vector.shape_cast %101 : vector<1x8x128xf32> to vector<8x128xf32>
      %c0_78 = arith.constant 0 : index
      %c0_79 = arith.constant 0 : index
      %c0_80 = arith.constant 0 : index
      %103 = vector.load %arg5[%c0_78, %c0_79, %c0_80] : memref<2x8x128xf32, #tpu.memory_space<vmem>>, vector<1x8x128xf32>
      %104 = vector.shape_cast %103 : vector<1x8x128xf32> to vector<8x128xf32>
      %105 = arith.truncf %100 : vector<8x128xf32> to vector<8x128xbf16>
      %c0_81 = arith.constant 0 : index
      %c0_82 = arith.constant 0 : index
      %106 = vector.load %arg6[%c0_81, %c0_82] : memref<128x512xbf16, #tpu.memory_space<vmem>>, vector<128x512xbf16>
      %cst_83 = arith.constant dense<0.000000e+00> : vector<8x512xf32>
      %107 = tpu.matmul %105, %106, %cst_83 {dimension_numbers = #tpu.dot_dimension_numbers<[1], [0], [0], [1], [0, 0, 1, 1], [], []>} : vector<8x128xbf16>, vector<128x512xbf16>, vector<8x512xf32> -> vector<8x512xf32>
      %108 = arith.truncf %102 : vector<8x128xf32> to vector<8x128xbf16>
      %c0_84 = arith.constant 0 : index
      %c0_85 = arith.constant 0 : index
      %109 = vector.load %arg7[%c0_84, %c0_85] : memref<128x512xbf16, #tpu.memory_space<vmem>>, vector<128x512xbf16>
      %cst_86 = arith.constant dense<0.000000e+00> : vector<8x512xf32>
      %110 = tpu.matmul %108, %109, %cst_86 {dimension_numbers = #tpu.dot_dimension_numbers<[1], [0], [0], [1], [0, 0, 1, 1], [], []>} : vector<8x128xbf16>, vector<128x512xbf16>, vector<8x512xf32> -> vector<8x512xf32>
      %111 = arith.addf %107, %110 : vector<8x512xf32>
      %c0_87 = arith.constant 0 : index
      %c0_88 = arith.constant 0 : index
      %112 = vector.load %arg8[%c0_87, %c0_88] : memref<1x512xf32, #tpu.memory_space<vmem>>, vector<1x512xf32>
      %113 = vector.broadcast %112 : vector<1x512xf32> to vector<8x512xf32>
      %114 = arith.addf %111, %113 : vector<8x512xf32>
      %115 = vector.extract_strided_slice %114 {offsets = [0, 0], sizes = [8, 128], strides = [1, 1]} : vector<8x512xf32> to vector<8x128xf32>
      %116 = arith.negf %115 : vector<8x128xf32>
      %117 = math.exp %116 : vector<8x128xf32>
      %cst_89 = arith.constant 1.000000e+00 : f32
      %118 = vector.broadcast %cst_89 : f32 to vector<8x128xf32>
      %119 = arith.addf %118, %117 : vector<8x128xf32>
      %120 = arith.divf %118, %119 : vector<8x128xf32>
      %121 = vector.extract_strided_slice %114 {offsets = [0, 128], sizes = [8, 128], strides = [1, 1]} : vector<8x512xf32> to vector<8x128xf32>
      %122 = arith.negf %121 : vector<8x128xf32>
      %123 = math.exp %122 : vector<8x128xf32>
      %cst_90 = arith.constant 1.000000e+00 : f32
      %124 = vector.broadcast %cst_90 : f32 to vector<8x128xf32>
      %125 = arith.addf %124, %123 : vector<8x128xf32>
      %126 = arith.divf %124, %125 : vector<8x128xf32>
      %127 = vector.extract_strided_slice %114 {offsets = [0, 256], sizes = [8, 128], strides = [1, 1]} : vector<8x512xf32> to vector<8x128xf32>
      %128 = math.tanh %127 : vector<8x128xf32>
      %129 = vector.extract_strided_slice %114 {offsets = [0, 384], sizes = [8, 128], strides = [1, 1]} : vector<8x512xf32> to vector<8x128xf32>
      %130 = arith.negf %129 : vector<8x128xf32>
      %131 = math.exp %130 : vector<8x128xf32>
      %cst_91 = arith.constant 1.000000e+00 : f32
      %132 = vector.broadcast %cst_91 : f32 to vector<8x128xf32>
      %133 = arith.addf %132, %131 : vector<8x128xf32>
      %134 = arith.divf %132, %133 : vector<8x128xf32>
      %135 = arith.mulf %126, %104 : vector<8x128xf32>
      %136 = arith.mulf %120, %128 : vector<8x128xf32>
      %137 = arith.addf %135, %136 : vector<8x128xf32>
      %138 = math.tanh %137 : vector<8x128xf32>
      %139 = arith.mulf %134, %138 : vector<8x128xf32>
      %c0_92 = arith.constant 0 : index
      %c0_93 = arith.constant 0 : index
      %c0_94 = arith.constant 0 : index
      %140 = vector.load %arg15[%c0_92, %c0_93, %c0_94] : memref<2x8x128xf32, #tpu.memory_space<vmem>>, vector<1x8x128xf32>
      %141 = vector.shape_cast %140 : vector<1x8x128xf32> to vector<8x128xf32>
      %142 = vector.shape_cast %139 : vector<8x128xf32> to vector<1x8x128xf32>
      tpu.vector_store %arg15[%c0_92, %c0_93, %c0_94], %142 {strides = array<i32>} : memref<2x8x128xf32, #tpu.memory_space<vmem>>, vector<1x8x128xf32>,
      %c0_95 = arith.constant 0 : index
      %c0_96 = arith.constant 0 : index
      %c0_97 = arith.constant 0 : index
      %143 = vector.load %arg16[%c0_95, %c0_96, %c0_97] : memref<2x8x128xf32, #tpu.memory_space<vmem>>, vector<1x8x128xf32>
      %144 = vector.shape_cast %143 : vector<1x8x128xf32> to vector<8x128xf32>
      %145 = vector.shape_cast %137 : vector<8x128xf32> to vector<1x8x128xf32>
      tpu.vector_store %arg16[%c0_95, %c0_96, %c0_97], %145 {strides = array<i32>} : memref<2x8x128xf32, #tpu.memory_space<vmem>>, vector<1x8x128xf32>,
      %c1 = arith.constant 1 : index
      %c0_98 = arith.constant 0 : index
      %c0_99 = arith.constant 0 : index
      %146 = vector.load %arg4[%c1, %c0_98, %c0_99] : memref<2x8x128xf32, #tpu.memory_space<vmem>>, vector<1x8x128xf32>
      %147 = vector.shape_cast %146 : vector<1x8x128xf32> to vector<8x128xf32>
      %c1_100 = arith.constant 1 : index
      %c0_101 = arith.constant 0 : index
      %c0_102 = arith.constant 0 : index
      %148 = vector.load %arg5[%c1_100, %c0_101, %c0_102] : memref<2x8x128xf32, #tpu.memory_space<vmem>>, vector<1x8x128xf32>
      %149 = vector.shape_cast %148 : vector<1x8x128xf32> to vector<8x128xf32>
      %150 = arith.truncf %139 : vector<8x128xf32> to vector<8x128xbf16>
      %c0_103 = arith.constant 0 : index
      %c0_104 = arith.constant 0 : index
      %151 = vector.load %arg9[%c0_103, %c0_104] : memref<128x512xbf16, #tpu.memory_space<vmem>>, vector<128x512xbf16>
      %cst_105 = arith.constant dense<0.000000e+00> : vector<8x512xf32>
      %152 = tpu.matmul %150, %151, %cst_105 {dimension_numbers = #tpu.dot_dimension_numbers<[1], [0], [0], [1], [0, 0, 1, 1], [], []>} : vector<8x128xbf16>, vector<128x512xbf16>, vector<8x512xf32> -> vector<8x512xf32>
      %153 = arith.truncf %147 : vector<8x128xf32> to vector<8x128xbf16>
      %c0_106 = arith.constant 0 : index
      %c0_107 = arith.constant 0 : index
      %154 = vector.load %arg10[%c0_106, %c0_107] : memref<128x512xbf16, #tpu.memory_space<vmem>>, vector<128x512xbf16>
      %cst_108 = arith.constant dense<0.000000e+00> : vector<8x512xf32>
      %155 = tpu.matmul %153, %154, %cst_108 {dimension_numbers = #tpu.dot_dimension_numbers<[1], [0], [0], [1], [0, 0, 1, 1], [], []>} : vector<8x128xbf16>, vector<128x512xbf16>, vector<8x512xf32> -> vector<8x512xf32>
      %156 = arith.addf %152, %155 : vector<8x512xf32>
      %c0_109 = arith.constant 0 : index
      %c0_110 = arith.constant 0 : index
      %157 = vector.load %arg11[%c0_109, %c0_110] : memref<1x512xf32, #tpu.memory_space<vmem>>, vector<1x512xf32>
      %158 = vector.broadcast %157 : vector<1x512xf32> to vector<8x512xf32>
      %159 = arith.addf %156, %158 : vector<8x512xf32>
      %160 = vector.extract_strided_slice %159 {offsets = [0, 0], sizes = [8, 128], strides = [1, 1]} : vector<8x512xf32> to vector<8x128xf32>
      %161 = arith.negf %160 : vector<8x128xf32>
      %162 = math.exp %161 : vector<8x128xf32>
      %cst_111 = arith.constant 1.000000e+00 : f32
      %163 = vector.broadcast %cst_111 : f32 to vector<8x128xf32>
      %164 = arith.addf %163, %162 : vector<8x128xf32>
      %165 = arith.divf %163, %164 : vector<8x128xf32>
      %166 = vector.extract_strided_slice %159 {offsets = [0, 128], sizes = [8, 128], strides = [1, 1]} : vector<8x512xf32> to vector<8x128xf32>
      %167 = arith.negf %166 : vector<8x128xf32>
      %168 = math.exp %167 : vector<8x128xf32>
      %cst_112 = arith.constant 1.000000e+00 : f32
      %169 = vector.broadcast %cst_112 : f32 to vector<8x128xf32>
      %170 = arith.addf %169, %168 : vector<8x128xf32>
      %171 = arith.divf %169, %170 : vector<8x128xf32>
      %172 = vector.extract_strided_slice %159 {offsets = [0, 256], sizes = [8, 128], strides = [1, 1]} : vector<8x512xf32> to vector<8x128xf32>
      %173 = math.tanh %172 : vector<8x128xf32>
      %174 = vector.extract_strided_slice %159 {offsets = [0, 384], sizes = [8, 128], strides = [1, 1]} : vector<8x512xf32> to vector<8x128xf32>
      %175 = arith.negf %174 : vector<8x128xf32>
      %176 = math.exp %175 : vector<8x128xf32>
      %cst_113 = arith.constant 1.000000e+00 : f32
      %177 = vector.broadcast %cst_113 : f32 to vector<8x128xf32>
      %178 = arith.addf %177, %176 : vector<8x128xf32>
      %179 = arith.divf %177, %178 : vector<8x128xf32>
      %180 = arith.mulf %171, %149 : vector<8x128xf32>
      %181 = arith.mulf %165, %173 : vector<8x128xf32>
      %182 = arith.addf %180, %181 : vector<8x128xf32>
      %183 = math.tanh %182 : vector<8x128xf32>
      %184 = arith.mulf %179, %183 : vector<8x128xf32>
      %c1_114 = arith.constant 1 : index
      %c0_115 = arith.constant 0 : index
      %c0_116 = arith.constant 0 : index
      %185 = vector.load %arg15[%c1_114, %c0_115, %c0_116] : memref<2x8x128xf32, #tpu.memory_space<vmem>>, vector<1x8x128xf32>
      %186 = vector.shape_cast %185 : vector<1x8x128xf32> to vector<8x128xf32>
      %187 = vector.shape_cast %184 : vector<8x128xf32> to vector<1x8x128xf32>
      tpu.vector_store %arg15[%c1_114, %c0_115, %c0_116], %187 {strides = array<i32>} : memref<2x8x128xf32, #tpu.memory_space<vmem>>, vector<1x8x128xf32>,
      %c1_117 = arith.constant 1 : index
      %c0_118 = arith.constant 0 : index
      %c0_119 = arith.constant 0 : index
      %188 = vector.load %arg16[%c1_117, %c0_118, %c0_119] : memref<2x8x128xf32, #tpu.memory_space<vmem>>, vector<1x8x128xf32>
      %189 = vector.shape_cast %188 : vector<1x8x128xf32> to vector<8x128xf32>
      %190 = vector.shape_cast %182 : vector<8x128xf32> to vector<1x8x128xf32>
      tpu.vector_store %arg16[%c1_117, %c0_118, %c0_119], %190 {strides = array<i32>} : memref<2x8x128xf32, #tpu.memory_space<vmem>>, vector<1x8x128xf32>,
      %c0_120 = arith.constant 0 : index
      %c0_121 = arith.constant 0 : index
      %191 = vector.load %arg18[%c0_120, %c0_121] : memref<8x128xf32, #tpu.memory_space<vmem>>, vector<8x128xf32>
      tpu.vector_store %arg18[%c0_120, %c0_121], %184 {strides = array<i32>} : memref<8x128xf32, #tpu.memory_space<vmem>>, vector<8x128xf32>,
    } else {
    }
    %c0 = arith.constant 0 : index
    %c0_1 = arith.constant 0 : index
    %3 = vector.load %arg18[%c0, %c0_1] : memref<8x128xf32, #tpu.memory_space<vmem>>, vector<8x128xf32>
    %4 = arith.truncf %3 : vector<8x128xf32> to vector<8x128xbf16>
    %c0_2 = arith.constant 0 : index
    %c0_3 = arith.constant 0 : index
    %5 = vector.load %arg12[%c0_2, %c0_3] : memref<128x128xbf16, #tpu.memory_space<vmem>>, vector<128x128xbf16>
    %cst = arith.constant dense<0.000000e+00> : vector<8x128xf32>
    %6 = tpu.matmul %4, %5, %cst {dimension_numbers = #tpu.dot_dimension_numbers<[1], [0], [0], [1], [0, 0, 1, 1], [], []>} : vector<8x128xbf16>, vector<128x128xbf16>, vector<8x128xf32> -> vector<8x128xf32>
    %c0_4 = arith.constant 0 : index
    %c0_5 = arith.constant 0 : index
    %7 = vector.load %arg13[%c0_4, %c0_5] : memref<1x128xf32, #tpu.memory_space<vmem>>, vector<1x128xf32>
    %8 = vector.broadcast %7 : vector<1x128xf32> to vector<8x128xf32>
    %9 = arith.addf %6, %8 : vector<8x128xf32>
    %c0_6 = arith.constant 0 : index
    %c0_7 = arith.constant 0 : index
    %10 = vector.load %arg14[%c0_6, %c0_7] : memref<8x128xf32, #tpu.memory_space<vmem>>, vector<8x128xf32>
    tpu.vector_store %arg14[%c0_6, %c0_7], %9 {strides = array<i32>} : memref<8x128xf32, #tpu.memory_space<vmem>>, vector<8x128xf32>,
    return
  }
  func.func @transform_1(%arg0: i32, %arg1: i32, %arg2: memref<8xi32, #tpu.memory_space<smem>>) -> (i32, i32, i32) {
    %c0_i32 = arith.constant 0 : i32
    %c0_i32_0 = arith.constant 0 : i32
    %c0_i32_1 = arith.constant 0 : i32
    return %c0_i32, %arg0, %c0_i32_0 : i32, i32, i32
  }
  func.func @transform_2(%arg0: i32, %arg1: i32, %arg2: memref<8xi32, #tpu.memory_space<smem>>) -> (i32, i32, i32) {
    %c0_i32 = arith.constant 0 : i32
    %c0_i32_0 = arith.constant 0 : i32
    %c0_i32_1 = arith.constant 0 : i32
    return %c0_i32, %arg0, %c0_i32_0 : i32, i32, i32
  }
  func.func @transform_3(%arg0: i32, %arg1: i32, %arg2: memref<8xi32, #tpu.memory_space<smem>>) -> (i32, i32) {
    %c0_i32 = arith.constant 0 : i32
    %c0_i32_0 = arith.constant 0 : i32
    %c0_i32_1 = arith.constant 0 : i32
    return %c0_i32, %c0_i32_0 : i32, i32
  }
  func.func @transform_4(%arg0: i32, %arg1: i32, %arg2: memref<8xi32, #tpu.memory_space<smem>>) -> (i32, i32) {
    %c0_i32 = arith.constant 0 : i32
    %c0_i32_0 = arith.constant 0 : i32
    %c0_i32_1 = arith.constant 0 : i32
    return %c0_i32, %c0_i32_0 : i32, i32
  }
  func.func @transform_5(%arg0: i32, %arg1: i32, %arg2: memref<8xi32, #tpu.memory_space<smem>>) -> (i32, i32) {
    %c0_i32 = arith.constant 0 : i32
    %c0_i32_0 = arith.constant 0 : i32
    %c0_i32_1 = arith.constant 0 : i32
    return %c0_i32, %c0_i32_0 : i32, i32
  }
  func.func @transform_6(%arg0: i32, %arg1: i32, %arg2: memref<8xi32, #tpu.memory_space<smem>>) -> (i32, i32) {
    %c0_i32 = arith.constant 0 : i32
    %c0_i32_0 = arith.constant 0 : i32
    %c0_i32_1 = arith.constant 0 : i32
    return %c0_i32, %c0_i32_0 : i32, i32
  }
  func.func @transform_7(%arg0: i32, %arg1: i32, %arg2: memref<8xi32, #tpu.memory_space<smem>>) -> (i32, i32) {
    %c0_i32 = arith.constant 0 : i32
    %c0_i32_0 = arith.constant 0 : i32
    %c0_i32_1 = arith.constant 0 : i32
    return %c0_i32, %c0_i32_0 : i32, i32
  }
  func.func @transform_8(%arg0: i32, %arg1: i32, %arg2: memref<8xi32, #tpu.memory_space<smem>>) -> (i32, i32) {
    %c0_i32 = arith.constant 0 : i32
    %c0_i32_0 = arith.constant 0 : i32
    %c0_i32_1 = arith.constant 0 : i32
    return %c0_i32, %c0_i32_0 : i32, i32
  }
  func.func @transform_9(%arg0: i32, %arg1: i32, %arg2: memref<8xi32, #tpu.memory_space<smem>>) -> (i32, i32) {
    %c0_i32 = arith.constant 0 : i32
    %c0_i32_0 = arith.constant 0 : i32
    return %c0_i32, %arg1 : i32, i32
  }
  func.func @transform_10(%arg0: i32, %arg1: i32, %arg2: memref<8xi32, #tpu.memory_space<smem>>) -> (i32, i32) {
    %c0_i32 = arith.constant 0 : i32
    %c0_i32_0 = arith.constant 0 : i32
    return %c0_i32, %arg1 : i32, i32
  }
  func.func @transform_11(%arg0: i32, %arg1: i32, %arg2: memref<8xi32, #tpu.memory_space<smem>>) -> (i32, i32) {
    %c0_i32 = arith.constant 0 : i32
    return %arg0, %arg1 : i32, i32
  }
  func.func @transform_12(%arg0: i32, %arg1: i32, %arg2: memref<8xi32, #tpu.memory_space<smem>>) -> (i32, i32, i32) {
    %c0_i32 = arith.constant 0 : i32
    %c0_i32_0 = arith.constant 0 : i32
    %c0_i32_1 = arith.constant 0 : i32
    return %c0_i32, %arg0, %c0_i32_0 : i32, i32, i32
  }
  func.func @transform_13(%arg0: i32, %arg1: i32, %arg2: memref<8xi32, #tpu.memory_space<smem>>) -> (i32, i32, i32) {
    %c0_i32 = arith.constant 0 : i32
    %c0_i32_0 = arith.constant 0 : i32
    %c0_i32_1 = arith.constant 0 : i32
    return %c0_i32, %arg0, %c0_i32_0 : i32, i32, i32
  }
}

</mosaic_0001>

<bundles_post_ra>
// kernel: tpu_custom_call.1
= control target key start
LH: loop header
LB: loop body
LE: loop exit
PB: predicated region body
PF: predicated region fallthrough
CT: control target
= control target key end

     0   :  { %s2905_s16 = smov [#allocation6]   ;;  %s3176_s0 = inlined_call_operand.hbm [shape: s32[8], index: 0, kind: input, shape index: {}]   ;;  %s3177_s1 = inlined_call_operand.hbm [shape: f32[128,128], index: 1, kind: input, shape index: {}]   ;;  %s3178_s2 = inlined_call_operand.hbm [shape: f32[2,8,128], index: 2, kind: input, shape index: {}]   ;;  %s3179_s3 = inlined_call_operand.hbm [shape: f32[2,8,128], index: 3, kind: input, shape index: {}]   ;;  %s3180_s4 = inlined_call_operand.hbm [shape: bf16[128,512], index: 4, kind: input, shape index: {}]   ;;  %s3181_s5 = inlined_call_operand.hbm [shape: bf16[128,512], index: 5, kind: input, shape index: {}]   ;;  %s3182_s6 = inlined_call_operand.vmem [shape: f32[1,512], index: 6, kind: input, shape index: {}]   ;;  %s3183_s7 = inlined_call_operand.hbm [shape: bf16[128,512], index: 7, kind: input, shape index: {}]   ;;  %s3184_s8 = inlined_call_operand.hbm [shape: bf16[128,512], index: 8, kind: input, shape index: {}]   ;;  %s3185_s9 = inlined_call_operand.vmem [shape: f32[1,512], index: 9, kind: input, shape index: {}]   ;;  %s3186_s10 = inlined_call_operand.hbm [shape: bf16[128,128], index: 10, kind: input, shape index: {}]   ;;  %s3187_s11 = inlined_call_operand.vmem [shape: f32[1,128], index: 11, kind: input, shape index: {}]   ;;  %s3188_s12 = inlined_call_operand.hbm [shape: f32[8,128], index: 12, kind: output, shape index: {0}]   ;;  %s3189_s13 = inlined_call_operand.hbm [shape: f32[2,8,128], index: 13, kind: output, shape index: {1}]   ;;  %s3190_s14 = inlined_call_operand.hbm [shape: f32[2,8,128], index: 14, kind: output, shape index: {2}]  }
   0x1   :  { %s21_s15 = sshll.u32 %s3176_s0, 4  ;;  %s22_s15 = int_to_ptr.hbm [resolvable:$true] %s21_s15 }
   0x2   :  { %24 = dma.hbm_to_smem %s22_s15, 16, %s2905_s16, [#allocation5] }
   0x3   :  { %2875 = dma.done.wait [#allocation5], 16 }
   0x4   :  { %2876 = vsyncadd [#allocation5], 4294967280 }
   0x5   :  { %27 = sfence }
   0x6   :  { %28 = vsyncpa [#allocation8], 0 }
   0x7   :  { %29 = vsyncpa [#allocation11], 0 }
   0x8   :  { %30 = vsyncpa [#allocation14], 0 }
   0x9   :  { %31 = vsyncpa [#allocation17], 0 }
   0xa   :  { %32 = vsyncpa [#allocation9], 0 }
   0xb   :  { %33 = vsyncpa [#allocation21], 0  ;;  %s51_s19 = sshll.u32 %s3179_s3, 4  ;;  %s2906_s20 = smov [#allocation10]   ;;  %s52_s19 = int_to_ptr.hbm [resolvable:$true] %s51_s19 }
   0xc   :  { %s53_s21 = sshll.u32 %s2906_s20, 4  ;;  %s2907_s0 = smov 128   ;;  %s54_s21 = int_to_ptr.vmem [resolvable:$true] %s53_s21 }
   0xd   :  { %s2908_s22 = smov 8   ;;  %s77_s25 = sshll.u32 %s3181_s5, 4  ;;  %s78_s25 = int_to_ptr.hbm [resolvable:$true] %s77_s25 }
   0xe   :  { %59 = dma.hbm_to_vmem [thread:$0]  %s52_s19, 256, %s54_s21, [#allocation11], %s2907_s0, %s2907_s0, %s2908_s22  }
   0xf   :  { %s2909_s26 = smov [#allocation13]   ;;  %s105_s3 = sshll.u32 %s3184_s8, 4  ;;  %s106_s3 = int_to_ptr.hbm [resolvable:$true] %s105_s3 }
  0x10   :  { %s79_s27 = sshll.u32 %s2909_s26, 4  ;;  %s2910_s30 = smov 256   ;;  %s80_s27 = int_to_ptr.vmem [resolvable:$true] %s79_s27 }
  0x11   :  { %s2911_s15 = smov 16   ;;  %s38_s18 = sshll.u32 %s3178_s2, 4  ;;  %s39_s18 = int_to_ptr.hbm [resolvable:$true] %s38_s18 }
  0x12   :  { %85 = dma.hbm_to_vmem [thread:$0]  %s78_s25, 4096, %s80_s27, [#allocation14], %s2910_s30, %s2910_s30, %s2911_s15  }
  0x13   :  { %s2912_s19 = smov [#allocation16]   ;;  %s2913_s5 = smov [#allocation7]  }
  0x14   :  { %s107_s20 = sshll.u32 %s2912_s19, 4  ;;  %s40_s21 = sshll.u32 %s2913_s5, 4  ;;  %s108_s20 = int_to_ptr.vmem [resolvable:$true] %s107_s20  ;;  %s41_s21 = int_to_ptr.vmem [resolvable:$true] %s40_s21 }
  0x15   :  { %113 = dma.hbm_to_vmem [thread:$0]  %s106_s3, 4096, %s108_s20, [#allocation17], %s2910_s30, %s2910_s30, %s2911_s15  }
  0x16   :  { %s64_s8 = sshll.u32 %s3180_s4, 4  ;;  %s92_s2 = sshll.u32 %s3183_s7, 4  ;;  %s65_s8 = int_to_ptr.hbm [resolvable:$true] %s64_s8  ;;  %s93_s2 = int_to_ptr.hbm [resolvable:$true] %s92_s2 }
  0x17   :  { %46 = dma.hbm_to_vmem [thread:$0]  %s39_s18, 256, %s41_s21, [#allocation8], %s2907_s0, %s2907_s0, %s2908_s22  }
  0x18   :  { %s2914_s27 = smov [#allocation12]   ;;  %s2915_s29 = smov [#allocation15]  }
  0x19   :  { %s66_s28 = sshll.u32 %s2914_s27, 4  ;;  %s94_s3 = sshll.u32 %s2915_s29, 4  ;;  %s67_s28 = int_to_ptr.vmem [resolvable:$true] %s66_s28  ;;  %s95_s3 = int_to_ptr.vmem [resolvable:$true] %s94_s3 }
  0x1a   :  { %72 = dma.hbm_to_vmem [thread:$0]  %s65_s8, 4096, %s67_s28, [#allocation11], %s2910_s30, %s2910_s30, %s2911_s15  }
  0x1b   :  { %s120_s4 = sshll.u32 %s3186_s10, 4  ;;  %s2916_s19 = smov [#allocation18]   ;;  %s121_s4 = int_to_ptr.hbm [resolvable:$true] %s120_s4 }
  0x1c   :  { %100 = dma.hbm_to_vmem [thread:$0]  %s93_s2, 4096, %s95_s3, [#allocation14], %s2910_s30, %s2910_s30, %s2911_s15  }
  0x1d   :  { %s122_s18 = sshll.u32 %s2916_s19, 4  ;;  %s2917_s20 = smov 64   ;;  %s123_s18 = int_to_ptr.vmem [resolvable:$true] %s122_s18 }
  0x1e   :  { %s2918_s5 = smov 4  }
  0x1f   :  { %128 = dma.hbm_to_vmem [thread:$0]  %s121_s4, 1024, %s123_s18, [#allocation17], %s2917_s20, %s2917_s20, %s2918_s5  }
  0x20   :  { %2877 = dma.done.wait [#allocation8], 256  }
  0x21   :  { %2878 = vsyncadd [#allocation8], 4294967040 }
  0x22   :  { %2879 = dma.done.wait [#allocation11], 4352  }
  0x23   :  { %2880 = vsyncadd [#allocation11], 4294962944 }
  0x24   :  { %2881 = dma.done.wait [#allocation14], 8192  }
  0x25   :  { %2882 = vsyncadd [#allocation14], 4294959104 }
  0x26   :  { %2883 = dma.done.wait [#allocation17], 5120  }
  0x27   :  { %2884 = vsyncadd [#allocation17], 4294962176  ;;  %s164_s7 = sld [smem:[#allocation6]]  ;;  %s2919_s21 = smov [#allocation2]  }
  0x28   :  { %s3035_s10 = sshll.u32 %s2919_s21, 4  ;;  %s1672_s30 = sld [smem:[#allocation6 + $0x1]]  ;;  %s176_s10 = int_to_ptr.vmem [resolvable:$true] %s3035_s10 }
  0x29   :  { %s2920_s15 = smov [#allocation2 + $0x1]   ;;  %s3040_s24 = sld [smem:[#allocation6 + $0x2]] }
  0x2a   :  { %s3038_s23 = sshll.u32 %s2920_s15, 4  ;;  %s2921_s8 = smov [#allocation2 + $0x2]   ;;  %s194_s23 = int_to_ptr.vmem [resolvable:$true] %s3038_s23 }
  0x2b   :  { %s3043_s25 = sshll.u32 %s2921_s8, 4  ;;  %s3045_s26 = sld [smem:[#allocation6 + $0x3]]  ;;  %s212_s25 = int_to_ptr.vmem [resolvable:$true] %s3043_s25 }
  0x2c   :  { %s2922_s29 = smov [#allocation2 + $0x3]   ;;  %s3059_s8 = scalar_lea.hbm %s3177_s1, 128 }
  0x2d   :  { %s165_s28 = scalar_lea.hbm %s3177_s1, %s164_s7  ;;  %s3051_s3 = sshll.u32 %s2922_s29, 4  ;;  %s230_s3 = int_to_ptr.vmem [resolvable:$true] %s3051_s3 }
  0x2e   :  { %s173_s16 = sshll.u32 %s165_s28, 4  ;;  %s181_s19 = scalar_lea.hbm %s3177_s1, %s1672_s30  ;;  %s174_s16 = int_to_ptr.hbm [resolvable:$true] %s173_s16 }
  0x2f   :  { %s191_s18 = sshll.u32 %s181_s19, 4  ;;  %s2611_s20 = sshra.s32 %s174_s16, 4  ;;  %s2612_s20 = int_to_ptr.hbm [resolvable:$true] %s2611_s20  ;;  %s192_s18 = int_to_ptr.hbm [resolvable:$true] %s191_s18 }
  0x30   :  { %s2613_s5 = scalar_lea.hbm %s2612_s20, 1  ;;  %p2616_p1 = scmp.lt.s32.totalorder %s2612_s20, %s3177_s1 }
  0x31   :  { %p2614_p0 = scmp.ne.s32.totalorder %s2612_s20, %s2613_s5  ;;  %p2617_p2 = scmp.lt.s32.totalorder %s3059_s8, %s2613_s5 }
  0x33   :  { %p2618_p3 = por %p2617_p2, %p2616_p1 }
  0x35   :  { %p2619_p4 = pnand %p2618_p3, %p2614_p0 }
  0x37   :  { %2622 = shalt.err (!%p2619_p4)  }
  0x38   :  { %178 = dma.hbm_to_vmem [thread:$0]  %s174_s16, 16, %s176_s10, [#allocation4] }
  0x39   :  { %s199_s28 = scalar_lea.hbm %s3177_s1, %s3040_s24  ;;  %s2635_s29 = sshra.s32 %s192_s18, 4  ;;  %s2636_s29 = int_to_ptr.hbm [resolvable:$true] %s2635_s29 }
  0x3a   :  { %s2637_s17 = scalar_lea.hbm %s2636_s29, 1  ;;  %p2640_p6 = scmp.lt.s32.totalorder %s2636_s29, %s3177_s1 }
  0x3b   :  { %p2638_p5 = scmp.ne.s32.totalorder %s2636_s29, %s2637_s17  ;;  %p2641_p7 = scmp.lt.s32.totalorder %s3059_s8, %s2637_s17 }
  0x3d   :  { %p2642_p8 = por %p2641_p7, %p2640_p6 }
  0x3f   :  { %p2643_p9 = pnand %p2642_p8, %p2638_p5 }
  0x41   :  { %2646 = shalt.err (!%p2643_p9)  }
  0x42   :  { %196 = dma.hbm_to_vmem [thread:$0]  %s192_s18, 16, %s194_s23, [#allocation4 + $0x1] }
  0x43   :  { %s209_s10 = sshll.u32 %s199_s28, 4  ;;  %s217_s20 = scalar_lea.hbm %s3177_s1, %s3045_s26  ;;  %s210_s10 = int_to_ptr.hbm [resolvable:$true] %s209_s10 }
  0x44   :  { %s227_s5 = sshll.u32 %s217_s20, 4  ;;  %s2659_s21 = sshra.s32 %s210_s10, 4  ;;  %s2660_s21 = int_to_ptr.hbm [resolvable:$true] %s2659_s21  ;;  %s228_s5 = int_to_ptr.hbm [resolvable:$true] %s227_s5 }
  0x45   :  { %s2661_s15 = scalar_lea.hbm %s2660_s21, 1  ;;  %p2664_p11 = scmp.lt.s32.totalorder %s2660_s21, %s3177_s1 }
  0x46   :  { %p2662_p10 = scmp.ne.s32.totalorder %s2660_s21, %s2661_s15  ;;  %p2665_p12 = scmp.lt.s32.totalorder %s3059_s8, %s2661_s15 }
  0x48   :  { %p2666_p13 = por %p2665_p12, %p2664_p11 }
  0x4a   :  { %p2667_p0 = pnand %p2666_p13, %p2662_p10 }
  0x4c   :  { %2670 = shalt.err (!%p2667_p0)  }
  0x4d   :  { %214 = dma.hbm_to_vmem [thread:$0]  %s210_s10, 16, %s212_s25, [#allocation4 + $0x2] }
  0x4e   :  { %s2683_s23 = sshra.s32 %s228_s5, 4  ;;  %s2684_s23 = int_to_ptr.hbm [resolvable:$true] %s2683_s23 }
  0x4f   :  { %s2685_s26 = scalar_lea.hbm %s2684_s23, 1  ;;  %p2688_p2 = scmp.lt.s32.totalorder %s2684_s23, %s3177_s1 }
  0x50   :  { %p2686_p1 = scmp.ne.s32.totalorder %s2684_s23, %s2685_s26  ;;  %p2689_p3 = scmp.lt.s32.totalorder %s3059_s8, %s2685_s26 }
  0x52   :  { %p2690_p4 = por %p2689_p3, %p2688_p2 }
  0x54   :  { %p2691_p5 = pnand %p2690_p4, %p2686_p1 }
  0x56   :  { %2694 = shalt.err (!%p2691_p5)  }
  0x57   :  { %232 = dma.hbm_to_vmem [thread:$0]  %s228_s5, 16, %s230_s3, [#allocation4 + $0x3] }
  0x58   :  { %s1675_s27 = sld [smem:[#allocation6 + $0x4]]  ;;  %s2923_s28 = smov [#allocation2 + $0x4]  }
  0x59   :  { %s247_s29 = sshll.u32 %s2923_s28, 4  ;;  %s1676_s17 = sld [smem:[#allocation6 + $0x5]]  ;;  %s248_s29 = int_to_ptr.vmem [resolvable:$true] %s247_s29 }
  0x5a   :  { %s2924_s25 = smov [#allocation2 + $0x5]   ;;  %s3092_s19 = sld [smem:[#allocation6 + $0x6]] }
  0x5b   :  { %s3090_s4 = sshll.u32 %s2924_s25, 4  ;;  %s2925_s10 = smov [#allocation2 + $0x6]   ;;  %s266_s4 = int_to_ptr.vmem [resolvable:$true] %s3090_s4 }
  0x5c   :  { %s3095_s16 = sshll.u32 %s2925_s10, 4  ;;  %s3097_s24 = sld [smem:[#allocation6 + $0x7]]  ;;  %s284_s16 = int_to_ptr.vmem [resolvable:$true] %s3095_s16 }
  0x5e   :  { %s235_s5 = scalar_lea.hbm %s3177_s1, %s1675_s27 }
  0x5f   :  { %s245_s21 = sshll.u32 %s235_s5, 4  ;;  %s253_s2 = scalar_lea.hbm %s3177_s1, %s1676_s17  ;;  %s246_s21 = int_to_ptr.hbm [resolvable:$true] %s245_s21 }
  0x60   :  { %s263_s23 = sshll.u32 %s253_s2, 4  ;;  %s2707_s26 = sshra.s32 %s246_s21, 4  ;;  %s2708_s26 = int_to_ptr.hbm [resolvable:$true] %s2707_s26  ;;  %s264_s23 = int_to_ptr.hbm [resolvable:$true] %s263_s23 }
  0x61   :  { %s2709_s18 = scalar_lea.hbm %s2708_s26, 1  ;;  %p2712_p7 = scmp.lt.s32.totalorder %s2708_s26, %s3177_s1 }
  0x62   :  { %p2710_p6 = scmp.ne.s32.totalorder %s2708_s26, %s2709_s18  ;;  %p2713_p8 = scmp.lt.s32.totalorder %s3059_s8, %s2709_s18 }
  0x64   :  { %p2714_p9 = por %p2713_p8, %p2712_p7 }
  0x66   :  { %p2715_p10 = pnand %p2714_p9, %p2710_p6 }
  0x68   :  { %2718 = shalt.err (!%p2715_p10)  }
  0x69   :  { %250 = dma.hbm_to_vmem [thread:$0]  %s246_s21, 16, %s248_s29, [#allocation4 + $0x4] }
  0x6a   :  { %s271_s25 = scalar_lea.hbm %s3177_s1, %s3092_s19  ;;  %s2731_s10 = sshra.s32 %s264_s23, 4  ;;  %s2732_s10 = int_to_ptr.hbm [resolvable:$true] %s2731_s10 }
  0x6b   :  { %s2733_s3 = scalar_lea.hbm %s2732_s10, 1  ;;  %p2736_p12 = scmp.lt.s32.totalorder %s2732_s10, %s3177_s1 }
  0x6c   :  { %p2734_p11 = scmp.ne.s32.totalorder %s2732_s10, %s2733_s3  ;;  %p2737_p13 = scmp.lt.s32.totalorder %s3059_s8, %s2733_s3 }
  0x6e   :  { %p2738_p0 = por %p2737_p13, %p2736_p12 }
  0x70   :  { %p2739_p1 = pnand %p2738_p0, %p2734_p11 }
  0x72   :  { %2742 = shalt.err (!%p2739_p1)  }
  0x73   :  { %268 = dma.hbm_to_vmem [thread:$0]  %s264_s23, 16, %s266_s4, [#allocation4 + $0x5] }
  0x74   :  { %s281_s29 = sshll.u32 %s271_s25, 4  ;;  %s289_s15 = scalar_lea.hbm %s3177_s1, %s3097_s24  ;;  %s282_s29 = int_to_ptr.hbm [resolvable:$true] %s281_s29 }
  0x75   :  { %s299_s7 = sshll.u32 %s289_s15, 4  ;;  %s2755_s2 = sshra.s32 %s282_s29, 4  ;;  %s2756_s2 = int_to_ptr.hbm [resolvable:$true] %s2755_s2  ;;  %s300_s7 = int_to_ptr.hbm [resolvable:$true] %s299_s7 }
  0x76   :  { %s2757_s26 = scalar_lea.hbm %s2756_s2, 1  ;;  %p2760_p3 = scmp.lt.s32.totalorder %s2756_s2, %s3177_s1 }
  0x77   :  { %p2758_p2 = scmp.ne.s32.totalorder %s2756_s2, %s2757_s26  ;;  %p2761_p4 = scmp.lt.s32.totalorder %s3059_s8, %s2757_s26 }
  0x79   :  { %p2762_p5 = por %p2761_p4, %p2760_p3 }
  0x7b   :  { %p2763_p6 = pnand %p2762_p5, %p2758_p2 }
  0x7d   :  { %2766 = shalt.err (!%p2763_p6)  }
  0x7e   :  { %286 = dma.hbm_to_vmem [thread:$0]  %s282_s29, 16, %s284_s16, [#allocation4 + $0x6] }
  0x7f   :  { %s2926_s4 = smov [#allocation2 + $0x7]   ;;  %s2779_s23 = sshra.s32 %s300_s7, 4  ;;  %s2780_s23 = int_to_ptr.hbm [resolvable:$true] %s2779_s23 }
  0x80   :  { %s301_s24 = sshll.u32 %s2926_s4, 4  ;;  %s2781_s28 = scalar_lea.hbm %s2780_s23, 1  ;;  %s302_s24 = int_to_ptr.vmem [resolvable:$true] %s301_s24 }
  0x81   :  { %p2782_p7 = scmp.ne.s32.totalorder %s2780_s23, %s2781_s28  ;;  %p2784_p8 = scmp.lt.s32.totalorder %s2780_s23, %s3177_s1 }
  0x82   :  { %p2785_p9 = scmp.lt.s32.totalorder %s3059_s8, %s2781_s28 }
  0x84   :  { %p2786_p10 = por %p2785_p9, %p2784_p8 }
  0x86   :  { %p2787_p11 = pnand %p2786_p10, %p2782_p7 }
  0x88   :  { %2790 = shalt.err (!%p2787_p11)  }
  0x89   :  { %304 = dma.hbm_to_vmem [thread:$0]  %s300_s7, 16, %s302_s24, [#allocation4 + $0x7] }
  0x8a   :  { %2885 = dma.done.wait [#allocation4], 16 }
  0x8b   :  { %2886 = vsyncadd [#allocation4], 4294967280 }
  0x8c   :  { %2887 = dma.done.wait [#allocation4 + $0x1], 16 }
  0x8d   :  { %2888 = vsyncadd [#allocation4 + $0x1], 4294967280 }
  0x8e   :  { %2889 = dma.done.wait [#allocation4 + $0x2], 16 }
  0x8f   :  { %2890 = vsyncadd [#allocation4 + $0x2], 4294967280 }
  0x90   :  { %2891 = dma.done.wait [#allocation4 + $0x3], 16 }
  0x91   :  { %2892 = vsyncadd [#allocation4 + $0x3], 4294967280 }
  0x92   :  { %2893 = dma.done.wait [#allocation4 + $0x4], 16 }
  0x93   :  { %2894 = vsyncadd [#allocation4 + $0x4], 4294967280 }
  0x94   :  { %2895 = dma.done.wait [#allocation4 + $0x5], 16 }
  0x95   :  { %2896 = vsyncadd [#allocation4 + $0x5], 4294967280 }
  0x96   :  { %2897 = dma.done.wait [#allocation4 + $0x6], 16 }
  0x97   :  { %2898 = vsyncadd [#allocation4 + $0x6], 4294967280 }
  0x98   :  { %2899 = dma.done.wait [#allocation4 + $0x7], 16 }
  0x99   :  { %2900 = vsyncadd [#allocation4 + $0x7], 4294967280  ;;  %v1793_v0 = vld [vmem:[#allocation13 + $0xe0] sm:$0xf]  ;;  %v2299_v1 = vld [vmem:[#allocation13 + $0xec] sm:$0xf0] }
  0x9a   :  { %v2297_v2 = vld [vmem:[#allocation13 + $0xe4] sm:$0xf]  ;;  %v1794_v3 = vor.u32 %v2299_v1, %v1793_v0  ;;  %v1795_v4 = vld [vmem:[#allocation13 + $0xf0] sm:$0xf0]  ;;  %v1801_v5 = vld [vmem:[#allocation13 + $0xe8] sm:$0xf] }
  0x9b   :  { %v2300_v6 = vld [vmem:[#allocation13 + $0xf4] sm:$0xf0]  ;;  %v1798_v7 = vor.u32 %v2297_v2, %v1795_v4  ;;  %v2298_v9 = vld [vmem:[#allocation13 + $0xec] sm:$0xf]  ;;  %v1803_v10 = vld [vmem:[#allocation13 + $0xf8] sm:$0xf0] }
  0x9c   :  { %v1802_v8 = vor.u32 %v2300_v6, %v1801_v5  ;;  %v1777_v11 = vld [vmem:[#allocation13 + $0xc0] sm:$0xf]  ;;  %551 = vmatpush.bf16.msra.mxu0 %v1794_v3  ;;  %v1806_v12 = vor.u32 %v2298_v9, %v1803_v10  ;;  %v2295_v13 = vld [vmem:[#allocation13 + $0xcc] sm:$0xf0]  ;;  %v2293_v14 = vld [vmem:[#allocation13 + $0xc4] sm:$0xf] }
  0x9d   :  { %v1779_v15 = vld [vmem:[#allocation13 + $0xd0] sm:$0xf0]  ;;  %564 = vmatpush.bf16.msra.mxu1 %v1798_v7  ;;  %v1778_v16 = vor.u32 %v2295_v13, %v1777_v11  ;;  %v1785_v18 = vld [vmem:[#allocation13 + $0xc8] sm:$0xf]  ;;  %v2296_v19 = vld [vmem:[#allocation13 + $0xd4] sm:$0xf0] }
  0x9e   :  { %577 = vmatpush.bf16.msra.mxu2 %v1802_v8  ;;  %v1782_v17 = vor.u32 %v2293_v14, %v1779_v15  ;;  %v2294_v20 = vld [vmem:[#allocation13 + $0xcc] sm:$0xf]  ;;  %590 = vmatpush.bf16.msra.mxu3 %v1806_v12  ;;  %v1786_v21 = vor.u32 %v2296_v19, %v1785_v18  ;;  %v1787_v22 = vld [vmem:[#allocation13 + $0xd8] sm:$0xf0]  ;;  %v1761_v23 = vld [vmem:[#allocation13 + $0xa0] sm:$0xf] }
  0x9f   :  { %v2291_v24 = vld [vmem:[#allocation13 + $0xac] sm:$0xf0]  ;;  %v1790_v25 = vor.u32 %v2294_v20, %v1787_v22  ;;  %v2289_v26 = vld [vmem:[#allocation13 + $0xa4] sm:$0xf]  ;;  %v1763_v27 = vld [vmem:[#allocation13 + $0xb0] sm:$0xf0] }
  0xa0   :  { %v1769_v28 = vld [vmem:[#allocation13 + $0xa8] sm:$0xf]  ;;  %552 = vmatpush.bf16.msra.mxu0 %v1778_v16  ;;  %v1762_v29 = vor.u32 %v2291_v24, %v1761_v23  ;;  %v2292_v30 = vld [vmem:[#allocation13 + $0xb4] sm:$0xf0]  ;;  %v2290_v31 = vld [vmem:[#allocation13 + $0xac] sm:$0xf]  ;;  %v1766_v33 = vor.u32 %v2289_v26, %v1763_v27 }
  0xa1   :  { %v1771_v32 = vld [vmem:[#allocation13 + $0xb8] sm:$0xf0]  ;;  %565 = vmatpush.bf16.msra.mxu1 %v1782_v17  ;;  %v1770_v34 = vor.u32 %v2292_v30, %v1769_v28  ;;  %v1745_v35 = vld [vmem:[#allocation13 + $0x80] sm:$0xf]  ;;  %v2287_v36 = vld [vmem:[#allocation13 + $0x8c] sm:$0xf0] }
  0xa2   :  { %578 = vmatpush.bf16.msra.mxu2 %v1786_v21  ;;  %v2285_v37 = vld [vmem:[#allocation13 + $0x84] sm:$0xf]  ;;  %591 = vmatpush.bf16.msra.mxu3 %v1790_v25  ;;  %v1774_v38 = vor.u32 %v2290_v31, %v1771_v32  ;;  %v1747_v39 = vld [vmem:[#allocation13 + $0x90] sm:$0xf0]  ;;  %v1753_v40 = vld [vmem:[#allocation13 + $0x88] sm:$0xf]  ;;  %v1746_v44 = vor.u32 %v2287_v36, %v1745_v35 }
  0xa3   :  { %v2288_v41 = vld [vmem:[#allocation13 + $0x94] sm:$0xf0]  ;;  %v2286_v42 = vld [vmem:[#allocation13 + $0x8c] sm:$0xf]  ;;  %v1755_v43 = vld [vmem:[#allocation13 + $0x98] sm:$0xf0]  ;;  %v1750_v45 = vor.u32 %v2285_v37, %v1747_v39 }
  0xa4   :  { %553 = vmatpush.bf16.msra.mxu0 %v1762_v29  ;;  %v1754_v46 = vor.u32 %v2288_v41, %v1753_v40  ;;  %v1729_v47 = vld [vmem:[#allocation13 + $0x60] sm:$0xf]  ;;  %v2283_v48 = vld [vmem:[#allocation13 + $0x6c] sm:$0xf0]  ;;  %v2281_v49 = vld [vmem:[#allocation13 + $0x64] sm:$0xf]  ;;  %v1758_v50 = vor.u32 %v2286_v42, %v1755_v43 }
  0xa5   :  { %566 = vmatpush.bf16.msra.mxu1 %v1766_v33  ;;  %v1731_v51 = vld [vmem:[#allocation13 + $0x70] sm:$0xf0]  ;;  %v1737_v52 = vld [vmem:[#allocation13 + $0x68] sm:$0xf]  ;;  %v2284_v53 = vld [vmem:[#allocation13 + $0x74] sm:$0xf0]  ;;  %v1730_v56 = vor.u32 %v2283_v48, %v1729_v47 }
  0xa6   :  { %579 = vmatpush.bf16.msra.mxu2 %v1770_v34  ;;  %592 = vmatpush.bf16.msra.mxu3 %v1774_v38  ;;  %v2282_v54 = vld [vmem:[#allocation13 + $0x6c] sm:$0xf]  ;;  %v1739_v55 = vld [vmem:[#allocation13 + $0x78] sm:$0xf0]  ;;  %v1734_v57 = vor.u32 %v2281_v49, %v1731_v51  ;;  %v1738_v58 = vor.u32 %v2284_v53, %v1737_v52  ;;  %v1713_v59 = vld [vmem:[#allocation13 + $0x40] sm:$0xf] }
  0xa7   :  { %v2279_v60 = vld [vmem:[#allocation13 + $0x4c] sm:$0xf0]  ;;  %v2277_v61 = vld [vmem:[#allocation13 + $0x44] sm:$0xf]  ;;  %v1742_v62 = vor.u32 %v2282_v54, %v1739_v55  ;;  %v1715_v63 = vld [vmem:[#allocation13 + $0x50] sm:$0xf0] }
  0xa8   :  { %554 = vmatpush.bf16.msra.mxu0 %v1746_v44  ;;  %v1721_v0 = vld [vmem:[#allocation13 + $0x48] sm:$0xf]  ;;  %v2280_v1 = vld [vmem:[#allocation13 + $0x54] sm:$0xf0]  ;;  %v2278_v2 = vld [vmem:[#allocation13 + $0x4c] sm:$0xf]  ;;  %v1714_v4 = vor.u32 %v2279_v60, %v1713_v59  ;;  %v1718_v5 = vor.u32 %v2277_v61, %v1715_v63 }
  0xa9   :  { %567 = vmatpush.bf16.msra.mxu1 %v1750_v45  ;;  %v1723_v3 = vld [vmem:[#allocation13 + $0x58] sm:$0xf0]  ;;  %v1722_v6 = vor.u32 %v2280_v1, %v1721_v0  ;;  %v1697_v7 = vld [vmem:[#allocation13 + $0x20] sm:$0xf]  ;;  %v2275_v8 = vld [vmem:[#allocation13 + $0x2c] sm:$0xf0] }
  0xaa   :  { %580 = vmatpush.bf16.msra.mxu2 %v1754_v46  ;;  %593 = vmatpush.bf16.msra.mxu3 %v1758_v50  ;;  %v2273_v9 = vld [vmem:[#allocation13 + $0x24] sm:$0xf]  ;;  %v1726_v10 = vor.u32 %v2278_v2, %v1723_v3  ;;  %v1699_v11 = vld [vmem:[#allocation13 + $0x30] sm:$0xf0]  ;;  %v1705_v12 = vld [vmem:[#allocation13 + $0x28] sm:$0xf]  ;;  %v1698_v16 = vor.u32 %v2275_v8, %v1697_v7 }
  0xab   :  { %v2276_v13 = vld [vmem:[#allocation13 + $0x34] sm:$0xf0]  ;;  %v2274_v14 = vld [vmem:[#allocation13 + $0x2c] sm:$0xf]  ;;  %v1707_v15 = vld [vmem:[#allocation13 + $0x38] sm:$0xf0]  ;;  %v1702_v19 = vor.u32 %v2273_v9, %v1699_v11 }
  0xac   :  { %555 = vmatpush.bf16.msra.mxu0 %v1730_v56  ;;  %v1681_v17 = vld [vmem:[#allocation13] sm:$0xf]  ;;  %v2271_v18 = vld [vmem:[#allocation13 + $0xc] sm:$0xf0]  ;;  %v1706_v20 = vor.u32 %v2276_v13, %v1705_v12  ;;  %v2269_v21 = vld [vmem:[#allocation13 + $0x4] sm:$0xf]  ;;  %v1710_v24 = vor.u32 %v2274_v14, %v1707_v15 }
  0xad   :  { %568 = vmatpush.bf16.msra.mxu1 %v1734_v57  ;;  %v1683_v22 = vld [vmem:[#allocation13 + $0x10] sm:$0xf0]  ;;  %v1689_v23 = vld [vmem:[#allocation13 + $0x8] sm:$0xf]  ;;  %v2272_v25 = vld [vmem:[#allocation13 + $0x14] sm:$0xf0]  ;;  %v1682_v31 = vor.u32 %v2271_v18, %v1681_v17 }
  0xae   :  { %581 = vmatpush.bf16.msra.mxu2 %v1738_v58  ;;  %594 = vmatpush.bf16.msra.mxu3 %v1742_v62  ;;  %v2270_v26 = vld [vmem:[#allocation13 + $0xc] sm:$0xf]  ;;  %v1691_v27 = vld [vmem:[#allocation13 + $0x18] sm:$0xf0]  ;;  %v1921_v28 = vld [vmem:[#allocation12 + $0xe0] sm:$0xf]  ;;  %v1686_v35 = vor.u32 %v2269_v21, %v1683_v22  ;;  %v1690_v36 = vor.u32 %v2272_v25, %v1689_v23 }
  0xaf   :  { %v2267_v29 = vld [vmem:[#allocation12 + $0xec] sm:$0xf0]  ;;  %v2265_v30 = vld [vmem:[#allocation12 + $0xe4] sm:$0xf]  ;;  %v1923_v32 = vld [vmem:[#allocation12 + $0xf0] sm:$0xf0]  ;;  %v1694_v40 = vor.u32 %v2270_v26, %v1691_v27 }
  0xb0   :  { %556 = vmatpush.bf16.msra.mxu0 %v1714_v4  ;;  %v1929_v33 = vld [vmem:[#allocation12 + $0xe8] sm:$0xf]  ;;  %v2268_v34 = vld [vmem:[#allocation12 + $0xf4] sm:$0xf0]  ;;  %v2266_v37 = vld [vmem:[#allocation12 + $0xec] sm:$0xf]  ;;  %v1922_v41 = vor.u32 %v2267_v29, %v1921_v28  ;;  %v1926_v42 = vor.u32 %v2265_v30, %v1923_v32 }
  0xb1   :  { %569 = vmatpush.bf16.msra.mxu1 %v1718_v5  ;;  %v1931_v38 = vld [vmem:[#allocation12 + $0xf8] sm:$0xf0]  ;;  %v323_v39 = vld [vmem:[#allocation7] sm:$0xff]  ;;  %v1930_v43 = vor.u32 %v2268_v34, %v1929_v33  ;;  %v2263_v45 = vld [vmem:[#allocation12 + $0xcc] sm:$0xf0]  ;;  %s1571_s10 = sshll.u32 %s3189_s13, 4  ;;  %s1572_s10 = int_to_ptr.hbm [resolvable:$true] %s1571_s10 }
  0xb2   :  { %582 = vmatpush.bf16.msra.mxu2 %v1722_v6  ;;  %595 = vmatpush.bf16.msra.mxu3 %v1726_v10  ;;  %v1905_v44 = vld [vmem:[#allocation12 + $0xc0] sm:$0xf]  ;;  %v2261_v46 = vld [vmem:[#allocation12 + $0xc4] sm:$0xf]  ;;  %v1934_v47 = vor.u32 %v2266_v37, %v1931_v38  ;;  %v1907_v48 = vld [vmem:[#allocation12 + $0xd0] sm:$0xf0]  ;;  %v358_v51 = vpack.c.bf16 %v323_v39, %v323_v39 }
  0xb3   :  { %v1913_v49 = vld [vmem:[#allocation12 + $0xc8] sm:$0xf]  ;;  %v2264_v50 = vld [vmem:[#allocation12 + $0xd4] sm:$0xf0]  ;;  %v2262_v52 = vld [vmem:[#allocation12 + $0xcc] sm:$0xf]  ;;  %v1906_v54 = vor.u32 %v2263_v45, %v1905_v44  ;;  %v1910_v55 = vor.u32 %v2261_v46, %v1907_v48 }
  0xb4   :  { %557 = vmatpush.bf16.msra.mxu0 %v1698_v16  ;;  %v1915_v53 = vld [vmem:[#allocation12 + $0xd8] sm:$0xf0]  ;;  %v1914_v56 = vor.u32 %v2264_v50, %v1913_v49  ;;  %v1889_v57 = vld [vmem:[#allocation12 + $0xa0] sm:$0xf]  ;;  %v2259_v58 = vld [vmem:[#allocation12 + $0xac] sm:$0xf0] }
  0xb5   :  { %570 = vmatpush.bf16.msra.mxu1 %v1702_v19  ;;  %v2257_v59 = vld [vmem:[#allocation12 + $0xa4] sm:$0xf]  ;;  %v1918_v60 = vor.u32 %v2262_v52, %v1915_v53  ;;  %v1891_v61 = vld [vmem:[#allocation12 + $0xb0] sm:$0xf0]  ;;  %v1897_v62 = vld [vmem:[#allocation12 + $0xa8] sm:$0xf]  ;;  %v1890_v2 = vor.u32 %v2259_v58, %v1889_v57 }
  0xb6   :  { %583 = vmatpush.bf16.msra.mxu2 %v1706_v20  ;;  %596 = vmatpush.bf16.msra.mxu3 %v1710_v24  ;;  %v2260_v63 = vld [vmem:[#allocation12 + $0xb4] sm:$0xf0]  ;;  %v2258_v0 = vld [vmem:[#allocation12 + $0xac] sm:$0xf]  ;;  %v1899_v1 = vld [vmem:[#allocation12 + $0xb8] sm:$0xf0]  ;;  %v1894_v3 = vor.u32 %v2257_v59, %v1891_v61 }
  0xb7   :  { %v1898_v4 = vor.u32 %v2260_v63, %v1897_v62  ;;  %v1873_v5 = vld [vmem:[#allocation12 + $0x80] sm:$0xf]  ;;  %v2255_v6 = vld [vmem:[#allocation12 + $0x8c] sm:$0xf0]  ;;  %v2253_v7 = vld [vmem:[#allocation12 + $0x84] sm:$0xf]  ;;  %v1902_v8 = vor.u32 %v2258_v0, %v1899_v1 }
  0xb8   :  { %558 = vmatpush.bf16.msra.mxu0 %v1682_v31  ;;  %v1875_v9 = vld [vmem:[#allocation12 + $0x90] sm:$0xf0]  ;;  %v1881_v10 = vld [vmem:[#allocation12 + $0x88] sm:$0xf]  ;;  %v2256_v11 = vld [vmem:[#allocation12 + $0x94] sm:$0xf0]  ;;  %v1874_v14 = vor.u32 %v2255_v6, %v1873_v5 }
  0xb9   :  { %571 = vmatpush.bf16.msra.mxu1 %v1686_v35  ;;  %v2254_v12 = vld [vmem:[#allocation12 + $0x8c] sm:$0xf]  ;;  %v1883_v13 = vld [vmem:[#allocation12 + $0x98] sm:$0xf0]  ;;  %v1857_v15 = vld [vmem:[#allocation12 + $0x60] sm:$0xf]  ;;  %v1878_v16 = vor.u32 %v2253_v7, %v1875_v9  ;;  %v1882_v17 = vor.u32 %v2256_v11, %v1881_v10 }
  0xba   :  { %584 = vmatpush.bf16.msra.mxu2 %v1690_v36  ;;  %597 = vmatpush.bf16.msra.mxu3 %v1694_v40  ;;  %v2251_v18 = vld [vmem:[#allocation12 + $0x6c] sm:$0xf0]  ;;  %v2249_v19 = vld [vmem:[#allocation12 + $0x64] sm:$0xf]  ;;  %v1859_v20 = vld [vmem:[#allocation12 + $0x70] sm:$0xf0]  ;;  %v1886_v21 = vor.u32 %v2254_v12, %v1883_v13 }
  0xbb   :  { %559 = vmatmul.bf16.vlgmr.msra.gmra.mxu0 %v358_v51  ;;  %v1865_v22 = vld [vmem:[#allocation12 + $0x68] sm:$0xf]  ;;  %v2252_v23 = vld [vmem:[#allocation12 + $0x74] sm:$0xf0]  ;;  %v2250_v24 = vld [vmem:[#allocation12 + $0x6c] sm:$0xf]  ;;  %v1858_v26 = vor.u32 %v2251_v18, %v1857_v15  ;;  %v1862_v27 = vor.u32 %v2249_v19, %v1859_v20 }
  0xbc   :  { %763 = vmatpush.bf16.msrb.mxu0 %v1922_v41  ;;  %572 = vmatmul.bf16.vlgmr.msra.gmra.mxu1 %v358_v51  ;;  %v1867_v25 = vld [vmem:[#allocation12 + $0x78] sm:$0xf0]  ;;  %v1866_v28 = vor.u32 %v2252_v23, %v1865_v22  ;;  %v1841_v29 = vld [vmem:[#allocation12 + $0x40] sm:$0xf]  ;;  %v2247_v30 = vld [vmem:[#allocation12 + $0x4c] sm:$0xf0] }
  0xbd   :  { %776 = vmatpush.bf16.msrb.mxu1 %v1926_v42  ;;  %598 = vmatmul.bf16.vlgmr.msra.gmra.mxu3 %v358_v51  ;;  %v2245_v31 = vld [vmem:[#allocation12 + $0x44] sm:$0xf]  ;;  %v1870_v32 = vor.u32 %v2250_v24, %v1867_v25  ;;  %v1843_v33 = vld [vmem:[#allocation12 + $0x50] sm:$0xf0]  ;;  %v1849_v34 = vld [vmem:[#allocation12 + $0x48] sm:$0xf]  ;;  %v1842_v38 = vor.u32 %v2247_v30, %v1841_v29 }
  0xbe   :  { %789 = vmatpush.bf16.msrb.mxu2 %v1930_v43  ;;  %802 = vmatpush.bf16.msrb.mxu3 %v1934_v47  ;;  %v2248_v35 = vld [vmem:[#allocation12 + $0x54] sm:$0xf0]  ;;  %v2246_v36 = vld [vmem:[#allocation12 + $0x4c] sm:$0xf]  ;;  %v1851_v37 = vld [vmem:[#allocation12 + $0x58] sm:$0xf0]  ;;  %v1846_v39 = vor.u32 %v2245_v31, %v1843_v33 }
  0xbf   :  { %585 = vmatmul.bf16.vlgmr.msra.gmra.mxu2 %v358_v51  ;;  %v1850_v40 = vor.u32 %v2248_v35, %v1849_v34  ;;  %v1825_v41 = vld [vmem:[#allocation12 + $0x20] sm:$0xf]  ;;  %v2243_v42 = vld [vmem:[#allocation12 + $0x2c] sm:$0xf0]  ;;  %v2241_v43 = vld [vmem:[#allocation12 + $0x24] sm:$0xf]  ;;  %v1854_v44 = vor.u32 %v2246_v36, %v1851_v37 }
  0xc0   :  { %764 = vmatpush.bf16.msrb.mxu0 %v1906_v54  ;;  %v1827_v45 = vld [vmem:[#allocation12 + $0x30] sm:$0xf0]  ;;  %v1833_v46 = vld [vmem:[#allocation12 + $0x28] sm:$0xf]  ;;  %v2244_v47 = vld [vmem:[#allocation12 + $0x34] sm:$0xf0]  ;;  %v1826_v50 = vor.u32 %v2243_v42, %v1825_v41 }
  0xc1   :  { %777 = vmatpush.bf16.msrb.mxu1 %v1910_v55  ;;  %v2242_v48 = vld [vmem:[#allocation12 + $0x2c] sm:$0xf]  ;;  %v1835_v49 = vld [vmem:[#allocation12 + $0x38] sm:$0xf0]  ;;  %v1830_v51 = vor.u32 %v2241_v43, %v1827_v45  ;;  %v1834_v52 = vor.u32 %v2244_v47, %v1833_v46  ;;  %v1809_v53 = vld [vmem:[#allocation12] sm:$0xf] }
  0xc2   :  { %790 = vmatpush.bf16.msrb.mxu2 %v1914_v56  ;;  %803 = vmatpush.bf16.msrb.mxu3 %v1918_v60  ;;  %v2239_v54 = vld [vmem:[#allocation12 + $0xc] sm:$0xf0]  ;;  %v2237_v55 = vld [vmem:[#allocation12 + $0x4] sm:$0xf]  ;;  %v1838_v56 = vor.u32 %v2242_v48, %v1835_v49  ;;  %v1811_v57 = vld [vmem:[#allocation12 + $0x10] sm:$0xf0] }
  0xc3   :  { %v1817_v58 = vld [vmem:[#allocation12 + $0x8] sm:$0xf]  ;;  %v2240_v59 = vld [vmem:[#allocation12 + $0x14] sm:$0xf0]  ;;  %v2238_v60 = vld [vmem:[#allocation12 + $0xc] sm:$0xf]  ;;  %v1810_v62 = vor.u32 %v2239_v54, %v1809_v53  ;;  %v1814_v0 = vor.u32 %v2237_v55, %v1811_v57 }
  0xc4   :  { %765 = vmatpush.bf16.msrb.mxu0 %v1890_v2  ;;  %v1819_v61 = vld [vmem:[#allocation12 + $0x18] sm:$0xf0]  ;;  %v1818_v1 = vor.u32 %v2240_v59, %v1817_v58  ;;  %v2363_v5 = vld [vmem:[#allocation16 + $0xec] sm:$0xf0]  ;;  %v2361_v6 = vld [vmem:[#allocation16 + $0xe4] sm:$0xf] }
  0xc5   :  { %778 = vmatpush.bf16.msrb.mxu1 %v1894_v3  ;;  %v322_v63 = vld [vmem:[#allocation2] sm:$0xff]  ;;  %v1822_v2 = vor.u32 %v2238_v60, %v1819_v61  ;;  %v2060_v9 = vld [vmem:[#allocation16 + $0xe8] sm:$0xf]  ;;  %v2362_v13 = vld [vmem:[#allocation16 + $0xec] sm:$0xf]  ;;  %s2927_s3 = smov [#allocation20]  }
  0xc6   :  { %791 = vmatpush.bf16.msrb.mxu2 %v1898_v4  ;;  %804 = vmatpush.bf16.msrb.mxu3 %v1902_v8  ;;  %v325_v3 = vpack.c.bf16 %v322_v63, %v322_v63  ;;  %v2052_v4 = vld [vmem:[#allocation16 + $0xe0] sm:$0xf]  ;;  %v2054_v8 = vld [vmem:[#allocation16 + $0xf0] sm:$0xf0]  ;;  %v2364_v10 = vld [vmem:[#allocation16 + $0xf4] sm:$0xf0] }
  0xc7   :  { %v2053_v7 = vor.u32 %v2363_v5, %v2052_v4  ;;  %v2057_v11 = vor.u32 %v2361_v6, %v2054_v8  ;;  %v2061_v12 = vor.u32 %v2364_v10, %v2060_v9  ;;  %v2036_v15 = vld [vmem:[#allocation16 + $0xc0] sm:$0xf]  ;;  %v2357_v18 = vld [vmem:[#allocation16 + $0xc4] sm:$0xf]  ;;  %v2038_v19 = vld [vmem:[#allocation16 + $0xd0] sm:$0xf0] }
  0xc8   :  { %766 = vmatpush.bf16.msrb.mxu0 %v1874_v14  ;;  %v2062_v14 = vld [vmem:[#allocation16 + $0xf8] sm:$0xf0]  ;;  %v2044_v22 = vld [vmem:[#allocation16 + $0xc8] sm:$0xf]  ;;  %v2360_v23 = vld [vmem:[#allocation16 + $0xd4] sm:$0xf0] }
  0xc9   :  { %779 = vmatpush.bf16.msrb.mxu1 %v1878_v16  ;;  %v2065_v16 = vor.u32 %v2362_v13, %v2062_v14  ;;  %v2358_v24 = vld [vmem:[#allocation16 + $0xcc] sm:$0xf]  ;;  %v2045_v25 = vor.u32 %v2360_v23, %v2044_v22  ;;  %v2355_v29 = vld [vmem:[#allocation16 + $0xac] sm:$0xf0]  ;;  %v2353_v30 = vld [vmem:[#allocation16 + $0xa4] sm:$0xf] }
  0xca   :  { %792 = vmatpush.bf16.msrb.mxu2 %v1882_v17  ;;  %805 = vmatpush.bf16.msrb.mxu3 %v1886_v21  ;;  %v2359_v17 = vld [vmem:[#allocation16 + $0xcc] sm:$0xf0]  ;;  %v2041_v21 = vor.u32 %v2357_v18, %v2038_v19  ;;  %v2028_v33 = vld [vmem:[#allocation16 + $0xa8] sm:$0xf]  ;;  %v2356_v34 = vld [vmem:[#allocation16 + $0xb4] sm:$0xf0] }
  0xcb   :  { %v2037_v20 = vor.u32 %v2359_v17, %v2036_v15  ;;  %v2029_v36 = vor.u32 %v2356_v34, %v2028_v33  ;;  %v2354_v37 = vld [vmem:[#allocation16 + $0xac] sm:$0xf]  ;;  %v2351_v41 = vld [vmem:[#allocation16 + $0x8c] sm:$0xf0]  ;;  %v2349_v42 = vld [vmem:[#allocation16 + $0x84] sm:$0xf] }
  0xcc   :  { %767 = vmatpush.bf16.msrb.mxu0 %v1858_v26  ;;  %v2046_v26 = vld [vmem:[#allocation16 + $0xd8] sm:$0xf0]  ;;  %v2012_v45 = vld [vmem:[#allocation16 + $0x88] sm:$0xf]  ;;  %v2352_v46 = vld [vmem:[#allocation16 + $0x94] sm:$0xf0] }
  0xcd   :  { %780 = vmatpush.bf16.msrb.mxu1 %v1862_v27  ;;  %v2049_v27 = vor.u32 %v2358_v24, %v2046_v26  ;;  %v2013_v48 = vor.u32 %v2352_v46, %v2012_v45  ;;  %v2350_v49 = vld [vmem:[#allocation16 + $0x8c] sm:$0xf]  ;;  %v1988_v53 = vld [vmem:[#allocation16 + $0x60] sm:$0xf]  ;;  %v2347_v54 = vld [vmem:[#allocation16 + $0x6c] sm:$0xf0] }
  0xce   :  { %793 = vmatpush.bf16.msrb.mxu2 %v1866_v28  ;;  %806 = vmatpush.bf16.msrb.mxu3 %v1870_v32  ;;  %v2020_v28 = vld [vmem:[#allocation16 + $0xa0] sm:$0xf]  ;;  %v2022_v32 = vld [vmem:[#allocation16 + $0xb0] sm:$0xf0]  ;;  %v2345_v57 = vld [vmem:[#allocation16 + $0x64] sm:$0xf] }
  0xcf   :  { %v2021_v31 = vor.u32 %v2355_v29, %v2020_v28  ;;  %v2025_v35 = vor.u32 %v2353_v30, %v2022_v32  ;;  %v1990_v58 = vld [vmem:[#allocation16 + $0x70] sm:$0xf0]  ;;  %v1996_v59 = vld [vmem:[#allocation16 + $0x68] sm:$0xf]  ;;  %v2348_v61 = vld [vmem:[#allocation16 + $0x74] sm:$0xf0] }
  0xd0   :  { %768 = vmatpush.bf16.msrb.mxu0 %v1842_v38  ;;  %v2030_v38 = vld [vmem:[#allocation16 + $0xb8] sm:$0xf0]  ;;  %v1993_v60 = vor.u32 %v2345_v57, %v1990_v58  ;;  %v2341_v4 = vld [vmem:[#allocation16 + $0x44] sm:$0xf]  ;;  %v1974_v6 = vld [vmem:[#allocation16 + $0x50] sm:$0xf0] }
  0xd1   :  { %781 = vmatpush.bf16.msrb.mxu1 %v1846_v39  ;;  %v2033_v39 = vor.u32 %v2354_v37, %v2030_v38  ;;  %v1998_v63 = vld [vmem:[#allocation16 + $0x78] sm:$0xf0]  ;;  %v2344_v8 = vld [vmem:[#allocation16 + $0x54] sm:$0xf0]  ;;  %v1977_v9 = vor.u32 %v2341_v4, %v1974_v6  ;;  %v1956_v17 = vld [vmem:[#allocation16 + $0x20] sm:$0xf] }
  0xd2   :  { %794 = vmatpush.bf16.msrb.mxu2 %v1850_v40  ;;  %807 = vmatpush.bf16.msrb.mxu3 %v1854_v44  ;;  %v2004_v40 = vld [vmem:[#allocation16 + $0x80] sm:$0xf]  ;;  %v2006_v44 = vld [vmem:[#allocation16 + $0x90] sm:$0xf0]  ;;  %v2339_v18 = vld [vmem:[#allocation16 + $0x2c] sm:$0xf0] }
  0xd3   :  { %v2005_v43 = vor.u32 %v2351_v41, %v2004_v40  ;;  %v2009_v47 = vor.u32 %v2349_v42, %v2006_v44  ;;  %v2337_v19 = vld [vmem:[#allocation16 + $0x24] sm:$0xf]  ;;  %v1958_v22 = vld [vmem:[#allocation16 + $0x30] sm:$0xf0]  ;;  %v1964_v23 = vld [vmem:[#allocation16 + $0x28] sm:$0xf] }
  0xd4   :  { %769 = vmatpush.bf16.msrb.mxu0 %v1826_v50  ;;  %v2014_v50 = vld [vmem:[#allocation16 + $0x98] sm:$0xf0]  ;;  %v2340_v24 = vld [vmem:[#allocation16 + $0x34] sm:$0xf0]  ;;  %v1940_v30 = vld [vmem:[#allocation16] sm:$0xf] }
  0xd5   :  { %782 = vmatpush.bf16.msrb.mxu1 %v1830_v51  ;;  %v2017_v51 = vor.u32 %v2350_v49, %v2014_v50  ;;  %v1965_v26 = vor.u32 %v2340_v24, %v1964_v23  ;;  %v1966_v28 = vld [vmem:[#allocation16 + $0x38] sm:$0xf0]  ;;  %v2333_v32 = vld [vmem:[#allocation16 + $0x4] sm:$0xf]  ;;  %v1942_v34 = vld [vmem:[#allocation16 + $0x10] sm:$0xf0] }
  0xd6   :  { %795 = vmatpush.bf16.msrb.mxu2 %v1834_v52  ;;  %808 = vmatpush.bf16.msrb.mxu3 %v1838_v56  ;;  %v1989_v56 = vor.u32 %v2347_v54, %v1988_v53  ;;  %v1945_v37 = vor.u32 %v2333_v32, %v1942_v34  ;;  %v1950_v40 = vld [vmem:[#allocation16 + $0x18] sm:$0xf0]  ;;  %v2180_v41 = vld [vmem:[#allocation15 + $0xe0] sm:$0xf]  ;;  %v2331_v44 = vld [vmem:[#allocation15 + $0xec] sm:$0xf0] }
  0xd7   :  { %v2329_v45 = vld [vmem:[#allocation15 + $0xe4] sm:$0xf]  ;;  %v2182_v46 = vld [vmem:[#allocation15 + $0xf0] sm:$0xf0]  ;;  %v2188_v50 = vld [vmem:[#allocation15 + $0xe8] sm:$0xf] }
  0xd8   :  { %770 = vmatpush.bf16.msrb.mxu0 %v1810_v62  ;;  %v2346_v62 = vld [vmem:[#allocation16 + $0x6c] sm:$0xf]  ;;  %v2185_v49 = vor.u32 %v2329_v45, %v2182_v46  ;;  %v2164_v57 = vld [vmem:[#allocation15 + $0xc0] sm:$0xf]  ;;  %v2327_v58 = vld [vmem:[#allocation15 + $0xcc] sm:$0xf0] }
  0xd9   :  { %783 = vmatpush.bf16.msrb.mxu1 %v1814_v0  ;;  %v1997_v0 = vor.u32 %v2348_v61, %v1996_v59  ;;  %v2330_v53 = vld [vmem:[#allocation15 + $0xec] sm:$0xf]  ;;  %v2325_v61 = vld [vmem:[#allocation15 + $0xc4] sm:$0xf]  ;;  %v2132_v23 = vld [vmem:[#allocation15 + $0x80] sm:$0xf] }
  0xda   :  { %796 = vmatpush.bf16.msrb.mxu2 %v1818_v1  ;;  %809 = vmatpush.bf16.msrb.mxu3 %v1822_v2  ;;  %v2001_v1 = vor.u32 %v2346_v62, %v1998_v63  ;;  %v1972_v2 = vld [vmem:[#allocation16 + $0x40] sm:$0xf]  ;;  %v2166_v62 = vld [vmem:[#allocation15 + $0xd0] sm:$0xf0]  ;;  %v2172_v63 = vld [vmem:[#allocation15 + $0xc8] sm:$0xf] }
  0xdb   :  { %771 = vmatmul.bf16.vlgmr.msrb.gmra.mxu0 %v325_v3  ;;  %v895_v6 = vld [vmem:[#allocation7 + $0x8] sm:$0xff]  ;;  %v2319_v24 = vld [vmem:[#allocation15 + $0x8c] sm:$0xf0]  ;;  %v2142_v32 = vld [vmem:[#allocation15 + $0x98] sm:$0xf0]  ;;  %s1569_s20 = sshll.u32 %s2927_s3, 4  ;;  %s1570_s20 = int_to_ptr.vmem [resolvable:$true] %s1569_s20 }
  0xdc   :  { %784 = vmatmul.bf16.vlgmr.msrb.gmra.mxu1 %v325_v3  ;;  %1124 = vmatpush.bf16.msra.mxu0 %v2053_v7  ;;  %v1980_v7 = vld [vmem:[#allocation16 + $0x48] sm:$0xf]  ;;  %v2316_v46 = vld [vmem:[#allocation15 + $0x74] sm:$0xf0]  ;;  %s2928_s5 = smov [#allocation22]   ;;  %s1584_s15 = sshll.u32 %s3190_s14, 4  ;;  %s1585_s15 = int_to_ptr.hbm [resolvable:$true] %s1584_s15 }
  0xdd   :  { %797 = vmatmul.bf16.vlgmr.msrb.gmra.mxu2 %v325_v3  ;;  %810 = vmatmul.bf16.vlgmr.msrb.gmra.mxu3 %v325_v3  ;;  %v2343_v3 = vld [vmem:[#allocation16 + $0x4c] sm:$0xf0]  ;;  %v1981_v10 = vor.u32 %v2344_v8, %v1980_v7  ;;  %v931_v7 = vpack.c.bf16 %v895_v6, %v895_v6  ;;  %v2148_v8 = vld [vmem:[#allocation15 + $0xa0] sm:$0xf]  ;;  %v2124_v45 = vld [vmem:[#allocation15 + $0x68] sm:$0xf] }
  0xde   :  { %1137 = vmatpush.bf16.msra.mxu1 %v2057_v11  ;;  %1150 = vmatpush.bf16.msra.mxu2 %v2061_v12  ;;  %v1973_v5 = vor.u32 %v2343_v3, %v1972_v2  ;;  %v2342_v11 = vld [vmem:[#allocation16 + $0x4c] sm:$0xf]  ;;  %v1982_v12 = vld [vmem:[#allocation16 + $0x58] sm:$0xf0]  ;;  %v2084_v6 = vld [vmem:[#allocation15 + $0x20] sm:$0xf] }
  0xdf   :  { %1163 = vmatpush.bf16.msra.mxu3 %v2065_v16  ;;  %v1985_v14 = vor.u32 %v2342_v11, %v1982_v12  ;;  %v2326_v2 = vld [vmem:[#allocation15 + $0xcc] sm:$0xf]  ;;  %v2174_v3 = vld [vmem:[#allocation15 + $0xd8] sm:$0xf0]  ;;  %v2150_v12 = vld [vmem:[#allocation15 + $0xb0] sm:$0xf0] }
  0xe0   :  { %1125 = vmatpush.bf16.msra.mxu0 %v2037_v20  ;;  %s1582_s29 = sshll.u32 %s2928_s5, 4  ;;  %s2929_s2 = smov [#allocation19]   ;;  %s1583_s29 = int_to_ptr.vmem [resolvable:$true] %s1582_s29 }
  0xe1   :  { %s1559_s26 = sshll.u32 %s2929_s2, 4  ;;  %s1561_s4 = sshll.u32 %s3188_s12, 4  ;;  %s1560_s26 = int_to_ptr.vmem [resolvable:$true] %s1559_s26  ;;  %s1562_s4 = int_to_ptr.hbm [resolvable:$true] %s1561_s4 }
  0xe2   :  { %1138 = vmatpush.bf16.msra.mxu1 %v2041_v21  ;;  %1151 = vmatpush.bf16.msra.mxu2 %v2045_v25  ;;  %v1957_v21 = vor.u32 %v2339_v18, %v1956_v17  ;;  %v1961_v25 = vor.u32 %v2337_v19, %v1958_v22  ;;  %v2322_v19 = vld [vmem:[#allocation15 + $0xac] sm:$0xf]  ;;  %v3145_v22 = vld [vmem:[%s3182_s6] sm:$0xf] }
  0xe3   :  { %1164 = vmatpush.bf16.msra.mxu3 %v2049_v27  ;;  %v2338_v27 = vld [vmem:[#allocation16 + $0x2c] sm:$0xf]  ;;  %v818_v34 = vperm.slane %v3145_v22, 1 }
  0xe4   :  { %1126 = vmatpush.bf16.msra.mxu0 %v2021_v31  ;;  %v1969_v29 = vor.u32 %v2338_v27, %v1966_v28  ;;  %v2335_v31 = vld [vmem:[#allocation16 + $0xc] sm:$0xf0]  ;;  %v2134_v27 = vld [vmem:[#allocation15 + $0x90] sm:$0xf0]  ;;  %v2140_v28 = vld [vmem:[#allocation15 + $0x88] sm:$0xf] }
  0xe5   :  { %v1941_v33 = vor.u32 %v2335_v31, %v1940_v30  ;;  %v2320_v30 = vld [vmem:[#allocation15 + $0x94] sm:$0xf0]  ;;  %v2318_v31 = vld [vmem:[#allocation15 + $0x8c] sm:$0xf] }
  0xe6   :  { %1139 = vmatpush.bf16.msra.mxu1 %v2025_v35  ;;  %1152 = vmatpush.bf16.msra.mxu2 %v2029_v36  ;;  %v1948_v35 = vld [vmem:[#allocation16 + $0x8] sm:$0xf]  ;;  %v2336_v36 = vld [vmem:[#allocation16 + $0x14] sm:$0xf0] }
  0xe7   :  { %1165 = vmatpush.bf16.msra.mxu3 %v2033_v39  ;;  %v1949_v38 = vor.u32 %v2336_v36, %v1948_v35  ;;  %v2334_v39 = vld [vmem:[#allocation16 + $0xc] sm:$0xf]  ;;  %v2141_v35 = vor.u32 %v2320_v30, %v2140_v28  ;;  %v2145_v36 = vor.u32 %v2318_v31, %v2142_v32  ;;  %v2070_v30 = vld [vmem:[#allocation15 + $0x10] sm:$0xf0]  ;;  %v2076_v31 = vld [vmem:[#allocation15 + $0x8] sm:$0xf] }
  0xe8   :  { %1127 = vmatpush.bf16.msra.mxu0 %v2005_v43  ;;  %v1953_v43 = vor.u32 %v2334_v39, %v1950_v40  ;;  %v2315_v39 = vld [vmem:[#allocation15 + $0x6c] sm:$0xf0]  ;;  %v2313_v40 = vld [vmem:[#allocation15 + $0x64] sm:$0xf]  ;;  %v2304_v32 = vld [vmem:[#allocation15 + $0x14] sm:$0xf0] }
  0xea   :  { %1140 = vmatpush.bf16.msra.mxu1 %v2009_v47  ;;  %1153 = vmatpush.bf16.msra.mxu2 %v2013_v48  ;;  %v2181_v48 = vor.u32 %v2331_v44, %v2180_v41  ;;  %v2118_v44 = vld [vmem:[#allocation15 + $0x70] sm:$0xf0] }
  0xeb   :  { %1166 = vmatpush.bf16.msra.mxu3 %v2017_v51  ;;  %v2332_v51 = vld [vmem:[#allocation15 + $0xf4] sm:$0xf0] }
  0xec   :  { %1128 = vmatpush.bf16.msra.mxu0 %v1989_v56  ;;  %v2189_v54 = vor.u32 %v2332_v51, %v2188_v50  ;;  %v2190_v56 = vld [vmem:[#allocation15 + $0xf8] sm:$0xf0]  ;;  %v2314_v50 = vld [vmem:[#allocation15 + $0x6c] sm:$0xf] }
  0xed   :  { %v2193_v59 = vor.u32 %v2330_v53, %v2190_v56  ;;  %v2126_v51 = vld [vmem:[#allocation15 + $0x78] sm:$0xf0] }
  0xee   :  { %1141 = vmatpush.bf16.msra.mxu1 %v1993_v60  ;;  %1154 = vmatpush.bf16.msra.mxu2 %v1997_v0  ;;  %v2165_v60 = vor.u32 %v2327_v58, %v2164_v57  ;;  %v2169_v0 = vor.u32 %v2325_v61, %v2166_v62  ;;  %v2129_v56 = vor.u32 %v2314_v50, %v2126_v51  ;;  %v2100_v57 = vld [vmem:[#allocation15 + $0x40] sm:$0xf]  ;;  %v2311_v58 = vld [vmem:[#allocation15 + $0x4c] sm:$0xf0]  ;;  %v2102_v62 = vld [vmem:[#allocation15 + $0x50] sm:$0xf0] }
  0xef   :  { %1167 = vmatpush.bf16.msra.mxu3 %v2001_v1  ;;  %v2328_v1 = vld [vmem:[#allocation15 + $0xd4] sm:$0xf0]  ;;  %v2101_v61 = vor.u32 %v2311_v58, %v2100_v57 }
  0xf0   :  { %1129 = vmatpush.bf16.msra.mxu0 %v1973_v5  ;;  %v2173_v4 = vor.u32 %v2328_v1, %v2172_v63  ;;  %v2177_v5 = vor.u32 %v2326_v2, %v2174_v3  ;;  %v2312_v1 = vld [vmem:[#allocation15 + $0x54] sm:$0xf0]  ;;  %v2310_v2 = vld [vmem:[#allocation15 + $0x4c] sm:$0xf] }
  0xf2   :  { %1142 = vmatpush.bf16.msra.mxu1 %v1977_v9  ;;  %1155 = vmatpush.bf16.msra.mxu2 %v1981_v10  ;;  %v2323_v9 = vld [vmem:[#allocation15 + $0xac] sm:$0xf0]  ;;  %v2321_v10 = vld [vmem:[#allocation15 + $0xa4] sm:$0xf] }
  0xf3   :  { %1168 = vmatpush.bf16.msra.mxu3 %v1985_v14  ;;  %v2149_v11 = vor.u32 %v2323_v9, %v2148_v8  ;;  %v2156_v14 = vld [vmem:[#allocation15 + $0xa8] sm:$0xf]  ;;  %v2153_v17 = vor.u32 %v2321_v10, %v2150_v12  ;;  %v2086_v12 = vld [vmem:[#allocation15 + $0x30] sm:$0xf0] }
  0xf4   :  { %1130 = vmatpush.bf16.msra.mxu0 %v1957_v21 }
  0xf6   :  { %1143 = vmatpush.bf16.msra.mxu1 %v1961_v25  ;;  %1156 = vmatpush.bf16.msra.mxu2 %v1965_v26  ;;  %v2133_v25 = vor.u32 %v2319_v24, %v2132_v23  ;;  %v2317_v26 = vld [vmem:[#allocation15 + $0x84] sm:$0xf]  ;;  %v2094_v23 = vld [vmem:[#allocation15 + $0x38] sm:$0xf0] }
  0xf7   :  { %1169 = vmatpush.bf16.msra.mxu3 %v1969_v29  ;;  %v2137_v29 = vor.u32 %v2317_v26, %v2134_v27  ;;  %v2303_v26 = vld [vmem:[#allocation15 + $0xc] sm:$0xf0]  ;;  %v2301_v27 = vld [vmem:[#allocation15 + $0x4] sm:$0xf] }
  0xf8   :  { %1131 = vmatpush.bf16.msra.mxu0 %v1941_v33  ;;  %v817_v33 = vperm.slane %v3145_v22, 0 }
  0xfa   :  { %1144 = vmatpush.bf16.msra.mxu1 %v1945_v37  ;;  %1157 = vmatpush.bf16.msra.mxu2 %v1949_v38  ;;  %v2116_v38 = vld [vmem:[#allocation15 + $0x60] sm:$0xf] }
  0xfb   :  { %1170 = vmatpush.bf16.msra.mxu3 %v1953_v43  ;;  %1132 = vmatmul.bf16.vlgmr.msra.gmra.mxu0 %v931_v7  ;;  %v2117_v43 = vor.u32 %v2315_v39, %v2116_v38 }
  0xfc   :  { %1336 = vmatpush.bf16.msrb.mxu0 %v2181_v48  ;;  %v2121_v48 = vor.u32 %v2313_v40, %v2118_v44  ;;  %v2077_v40 = vor.u32 %v2304_v32, %v2076_v31 }
  0xfd   :  { %1145 = vmatmul.bf16.vlgmr.msra.gmra.mxu1 %v931_v7  ;;  %1158 = vmatmul.bf16.vlgmr.msra.gmra.mxu2 %v931_v7 }
  0xfe   :  { %1349 = vmatpush.bf16.msrb.mxu1 %v2185_v49  ;;  %1362 = vmatpush.bf16.msrb.mxu2 %v2189_v54  ;;  %v2125_v49 = vor.u32 %v2316_v46, %v2124_v45  ;;  %v820_v54 = vperm.slane %v3145_v22, 3  ;;  %v819_v46 = vperm.slane %v3145_v22, 2 }
  0xff   :  { %1375 = vmatpush.bf16.msrb.mxu3 %v2193_v59  ;;  %v2309_v59 = vld [vmem:[#allocation15 + $0x44] sm:$0xf] }
 0x100   :  { %1337 = vmatpush.bf16.msrb.mxu0 %v2165_v60  ;;  %1171 = vmatmul.bf16.vlgmr.msra.gmra.mxu3 %v931_v7  ;;  %v2307_v7 = vld [vmem:[#allocation15 + $0x2c] sm:$0xf0] }
 0x102   :  { %1350 = vmatpush.bf16.msrb.mxu1 %v2169_v0  ;;  %1363 = vmatpush.bf16.msrb.mxu2 %v2173_v4  ;;  %v2105_v0 = vor.u32 %v2309_v59, %v2102_v62 }
 0x103   :  { %1376 = vmatpush.bf16.msrb.mxu3 %v2177_v5  ;;  %v2110_v5 = vld [vmem:[#allocation15 + $0x58] sm:$0xf0] }
 0x104   :  { %1338 = vmatpush.bf16.msrb.mxu0 %v2149_v11  ;;  %v2113_v10 = vor.u32 %v2310_v2, %v2110_v5  ;;  %v2305_v11 = vld [vmem:[#allocation15 + $0x24] sm:$0xf] }
 0x106   :  { %1351 = vmatpush.bf16.msrb.mxu1 %v2153_v17 }
 0x108   :  { %1339 = vmatpush.bf16.msrb.mxu0 %v2133_v25  ;;  %v2068_v25 = vld [vmem:[#allocation15] sm:$0xf] }
 0x10a   :  { %1352 = vmatpush.bf16.msrb.mxu1 %v2137_v29 }
 0x10c   :  { %1340 = vmatpush.bf16.msrb.mxu0 %v2117_v43 }
 0x10e   :  { %1353 = vmatpush.bf16.msrb.mxu1 %v2121_v48 }
 0x110   :  { %1341 = vmatpush.bf16.msrb.mxu0 %v2101_v61 }
 0x112   :  { %1354 = vmatpush.bf16.msrb.mxu1 %v2105_v0 }
 0x138   :  { %v3134_v52 = vpop.f32.mrf.mxu0 }
 0x139   :  { %v3136_v55 = vpop.f32.mrf.mxu1 }
 0x140   :  { %v3138_v13 = vpop.f32.mrf.mxu3  ;;  %v562_v15 = vpop.f32.mrf.mxu0 }
 0x141   :  { %v575_v20 = vpop.f32.mrf.mxu1  ;;  %v2324_v15 = vld [vmem:[#allocation15 + $0xb4] sm:$0xf0] }
 0x142   :  { %v3140_v16 = vpop.f32.mrf.mxu2  ;;  %v2157_v18 = vor.u32 %v2324_v15, %v2156_v14  ;;  %v2158_v20 = vld [vmem:[#allocation15 + $0xb8] sm:$0xf0]  ;;  %v2092_v14 = vld [vmem:[#allocation15 + $0x28] sm:$0xf] }
 0x143   :  { %v2161_v21 = vor.u32 %v2322_v19, %v2158_v20  ;;  %v2089_v19 = vor.u32 %v2305_v11, %v2086_v12  ;;  %v2308_v20 = vld [vmem:[#allocation15 + $0x34] sm:$0xf0] }
 0x144   :  { %1364 = vmatpush.bf16.msrb.mxu2 %v2157_v18  ;;  %v2085_v18 = vor.u32 %v2307_v7, %v2084_v6  ;;  %v2093_v24 = vor.u32 %v2308_v20, %v2092_v14 }
 0x145   :  { %1377 = vmatpush.bf16.msrb.mxu3 %v2161_v21  ;;  %v2306_v21 = vld [vmem:[#allocation15 + $0x2c] sm:$0xf]  ;;  %1355 = vmatpush.bf16.msrb.mxu1 %v2089_v19 }
 0x146   :  { %v2097_v29 = vor.u32 %v2306_v21, %v2094_v23  ;;  %1342 = vmatpush.bf16.msrb.mxu0 %v2085_v18 }
 0x148   :  { %v601_v42 = vpop.f32.mrf.mxu3  ;;  %1365 = vmatpush.bf16.msrb.mxu2 %v2141_v35 }
 0x149   :  { %1378 = vmatpush.bf16.msrb.mxu3 %v2145_v36  ;;  %v2069_v36 = vor.u32 %v2303_v26, %v2068_v25 }
 0x14a   :  { %v588_v47 = vpop.f32.mrf.mxu2 }
 0x14b   :  { %1343 = vmatpush.bf16.msrb.mxu0 %v2069_v36  ;;  %v2369_v36 = vld [vmem:[#allocation18 + $0x20] sm:$0xff] }
 0x14c   :  { %1366 = vmatpush.bf16.msrb.mxu2 %v2125_v49 }
 0x14d   :  { %1379 = vmatpush.bf16.msrb.mxu3 %v2129_v56 }
 0x151   :  { %1380 = vmatpush.bf16.msrb.mxu3 %v2113_v10 }
 0x155   :  { %1381 = vmatpush.bf16.msrb.mxu3 %v2097_v29 }
 0x158   :  { %v772_v37 = vpop.f32.mrf.mxu0 }
 0x159   :  { %v773_v41 = vadd.f32 %v772_v37, %v3134_v52  ;;  %v785_v42 = vpop.f32.mrf.mxu1  ;;  %v2073_v37 = vor.u32 %v2301_v27, %v2070_v30 }
 0x15a   :  { %v786_v47 = vadd.f32 %v785_v42, %v3136_v55  ;;  %v2108_v55 = vld [vmem:[#allocation15 + $0x48] sm:$0xf] }
 0x15b   :  { %v825_v53 = vadd.f32 %v817_v33, %v773_v41  ;;  %v2109_v4 = vor.u32 %v2312_v1, %v2108_v55  ;;  %v2078_v33 = vld [vmem:[#allocation15 + $0x18] sm:$0xf0]  ;;  %1356 = vmatpush.bf16.msrb.mxu1 %v2073_v37  ;;  %v324_v1 = vld [vmem:[#allocation10] sm:$0xff] }
 0x15c   :  { %v826_v52 = vadd.f32 %v818_v34, %v786_v47 }
 0x15d   :  { %v1935_v60 = vmul.f32 -1.442695, %v825_v53  ;;  %1367 = vmatpush.bf16.msrb.mxu2 %v2109_v4 }
 0x15e   :  { %v1936_v63 = vmul.f32 -1.442695, %v826_v52 }
 0x15f   :  { %2399 = vpow2.f32 %v1935_v60 }
 0x160   :  { %v798_v3 = vpop.f32.mrf.mxu2  ;;  %2401 = vpow2.f32 %v1936_v63  ;;  %v811_v8 = vpop.f32.mrf.mxu3 }
 0x161   :  { %v774_v9 = vpop.f32.mrf.mxu0  ;;  %v812_v15 = vadd.f32 %v811_v8, %v3138_v13  ;;  %v787_v17 = vpop.f32.mrf.mxu1  ;;  %v2302_v13 = vld [vmem:[#allocation15 + $0xc] sm:$0xf]  ;;  %1368 = vmatpush.bf16.msrb.mxu2 %v2093_v24  ;;  %v799_v45 = vadd.f32 %v798_v3, %v3140_v16 }
 0x162   :  { %v2081_v43 = vor.u32 %v2302_v13, %v2078_v33  ;;  %v2372_v13 = vld [vmem:[#allocation18 + $0x38] sm:$0xff]  ;;  %v2371_v33 = vld [vmem:[#allocation18 + $0x30] sm:$0xff] }
 0x163   :  { %v828_v28 = vadd.f32 %v820_v54, %v812_v15  ;;  %v827_v49 = vadd.f32 %v819_v46, %v799_v45  ;;  %1540 = vmatpush.bf16.msra.mxu0 %v2372_v13 }
 0x164   :  { %1382 = vmatpush.bf16.msrb.mxu3 %v2081_v43  ;;  %v2368_v43 = vld [vmem:[#allocation18 + $0x18] sm:$0xff] }
 0x165   :  { %v2400_v34 = vpop.eup %2399  ;;  %v1937_v35 = vmul.f32 -1.442695, %v828_v28  ;;  %1369 = vmatpush.bf16.msrb.mxu2 %v2077_v40 }
 0x166   :  { %v2402_v38 = vpop.eup %2401  ;;  %v832_v39 = vadd.f32 1.0, %v2400_v34  ;;  %v2370_v34 = vld [vmem:[#allocation18 + $0x28] sm:$0xff] }
 0x167   :  { %v851_v41 = vadd.f32 1.0, %v2402_v38  ;;  %2403 = vpow2.f32 %v1937_v35  ;;  %1541 = vmatpush.bf16.msra.mxu0 %v2371_v33  ;;  %v1388_v35 = vld [vmem:[%s3185_s9] sm:$0xf] }
 0x168   :  { %v800_v42 = vpop.f32.mrf.mxu2  ;;  %2405 = vrcp.f32 %v832_v39  ;;  %v813_v44 = vpop.f32.mrf.mxu3  ;;  %v844_v57 = vand.u32 2147483648, %v832_v39  ;;  %v842_v16 = vand.u32 2147483647, %v832_v39  ;;  %vm838_vm2 = vweird.f32 %v832_v39 }
 0x169   :  { %2407 = vrcp.f32 %v851_v41  ;;  %v863_v58 = vand.u32 2147483648, %v851_v41  ;;  %v861_v22 = vand.u32 2147483647, %v851_v41  ;;  %vm857_vm3 = vweird.f32 %v851_v41 }
 0x16a   :  { %v845_v55 = vor.u32 1.1754944e-38, %v844_v57  ;;  %vm843_vm6 = vcmp.eq.f32.partialorder %v842_v16, 8.507059e+37  ;;  %v1390_v37 = vperm.slane %v1388_v35, 0  ;;  %v1391_v38 = vperm.slane %v1388_v35, 1 }
 0x16b   :  { %v864_v0 = vor.u32 1.1754944e-38, %v863_v58  ;;  %vm862_vm7 = vcmp.eq.f32.partialorder %v861_v22, 8.507059e+37  ;;  %1542 = vmatpush.bf16.msra.mxu0 %v2370_v34  ;;  %v2365_v58 = vld [vmem:[#allocation18] sm:$0xff] }
 0x16d   :  { %v2404_v47 = vpop.eup %2403 }
 0x16e   :  { %v2406_v48 = vpop.eup %2405  ;;  %v871_v50 = vadd.f32 1.0, %v2404_v47 }
 0x16f   :  { %v2408_v51 = vpop.eup %2407  ;;  %v834_v53 = vmul.f32 %v2406_v48, %v832_v39  ;;  %vm839_vm0 = vweird.f32 %v2406_v48  ;;  %1543 = vmatpush.bf16.msra.mxu0 %v2369_v36 }
 0x170   :  { %v853_v54 = vmul.f32 %v2408_v51, %v851_v41  ;;  %2409 = vrcp.f32 %v871_v50  ;;  %vm858_vm1 = vweird.f32 %v2408_v51  ;;  %vm840_vm4 = vmor %vm838_vm2, %vm839_vm0  ;;  %v883_v15 = vand.u32 2147483648, %v871_v50 }
 0x171   :  { %v835_v56 = vsub.f32 1.0, %v834_v53  ;;  %2411 = vtanh.f32 %v827_v49  ;;  %vm859_vm5 = vmor %vm857_vm3, %vm858_vm1  ;;  %vm877_vm9 = vweird.f32 %v871_v50  ;;  %v881_v17 = vand.u32 2147483647, %v871_v50  ;;  %v2366_v53 = vld [vmem:[#allocation18 + $0x8] sm:$0xff] }
 0x172   :  { %v854_v52 = vsub.f32 1.0, %v853_v54  ;;  %v884_v19 = vor.u32 1.1754944e-38, %v883_v15  ;;  %v1393_v49 = vperm.slane %v1388_v35, 3 }
 0x173   :  { %v836_v59 = vmul.f32 %v2406_v48, %v835_v56  ;;  %vm882_vm11 = vcmp.eq.f32.partialorder %v881_v17, 8.507059e+37  ;;  %1544 = vmatpush.bf16.msra.mxu0 %v2368_v43 }
 0x174   :  { %v855_v60 = vmul.f32 %v2408_v51, %v854_v52 }
 0x175   :  { %v837_v61 = vadd.f32 %v2406_v48, %v836_v59 }
 0x176   :  { %v2410_v62 = vpop.eup %2409  ;;  %v856_v63 = vadd.f32 %v2408_v51, %v855_v60 }
 0x177   :  { %v841_v2 = vsel %vm840_vm4, %v2406_v48, %v837_v61  ;;  %v873_v3 = vmul.f32 %v2410_v62, %v871_v50  ;;  %v2412_v4 = vpop.eup %2411  ;;  %vm878_vm8 = vweird.f32 %v2410_v62  ;;  %v2367_v48 = vld [vmem:[#allocation18 + $0x10] sm:$0xff] }
 0x178   :  { %v846_v5 = vsel %vm843_vm6, %v845_v55, %v841_v2  ;;  %v860_v6 = vsel %vm859_vm5, %v2408_v51, %v856_v63  ;;  %vm879_vm10 = vmor %vm877_vm9, %vm878_vm8  ;;  %v1133_v25 = vpop.f32.mrf.mxu0  ;;  %1545 = vmatpush.bf16.msra.mxu0 %v2367_v48 }
 0x179   :  { %v865_v7 = vsel %vm862_vm7, %v864_v0, %v860_v6  ;;  %v888_v8 = vmul.f32 %v2412_v4, %v846_v5  ;;  %v874_v9 = vsub.f32 1.0, %v873_v3  ;;  %v1392_v0 = vperm.slane %v1388_v35, 2 }
 0x17a   :  { %v887_v10 = vmul.f32 %v865_v7, %v324_v1  ;;  %v1146_v26 = vpop.f32.mrf.mxu1 }
 0x17b   :  { %v875_v11 = vmul.f32 %v2410_v62, %v874_v9 }
 0x17c   :  { %v889_v12 = vadd.f32 %v888_v8, %v887_v10  ;;  %1546 = vmatpush.bf16.msra.mxu0 %v2366_v53 }
 0x17d   :  { %v876_v14 = vadd.f32 %v2410_v62, %v875_v11 }
 0x17e   :  { %2413 = vtanh.f32 %v889_v12  ;;  %893 = vst [vmem:[#allocation22] sm:$0xff] %v889_v12 }
 0x17f   :  { %v880_v18 = vsel %vm879_vm10, %v2410_v62, %v876_v14 }
 0x180   :  { %v885_v21 = vsel %vm882_vm11, %v884_v19, %v880_v18  ;;  %v1135_v27 = vpop.f32.mrf.mxu0  ;;  %v1159_v30 = vpop.f32.mrf.mxu2  ;;  %1547 = vmatpush.bf16.msra.mxu0 %v2365_v58 }
 0x182   :  { %v1148_v29 = vpop.f32.mrf.mxu1 }
 0x183   :  { %v1172_v28 = vpop.f32.mrf.mxu3 }
 0x184   :  { %v2414_v20 = vpop.eup %2413 }
 0x185   :  { %v891_v23 = vmul.f32 %v2414_v20, %v885_v21 }
 0x187   :  { %v898_v24 = vpack.c.bf16 %v891_v23, %v891_v23  ;;  %892 = vst [vmem:[#allocation20] sm:$0xff] %v891_v23 }
 0x188   :  { %v1161_v32 = vpop.f32.mrf.mxu2 }
 0x189   :  { %1344 = vmatmul.bf16.vlgmr.msrb.gmra.mxu0 %v898_v24  ;;  %1357 = vmatmul.bf16.vlgmr.msrb.gmra.mxu1 %v898_v24 }
 0x18a   :  { %1370 = vmatmul.bf16.vlgmr.msrb.gmra.mxu2 %v898_v24  ;;  %1383 = vmatmul.bf16.vlgmr.msrb.gmra.mxu3 %v898_v24 }
 0x18b   :  { %v1174_v31 = vpop.f32.mrf.mxu3 }
 0x206   :  { %v1345_v39 = vpop.f32.mrf.mxu0  ;;  %v1358_v40 = vpop.f32.mrf.mxu1 }
 0x207   :  { %v1346_v41 = vadd.f32 %v1345_v39, %v1133_v25  ;;  %v1359_v42 = vadd.f32 %v1358_v40, %v1146_v26  ;;  %v897_v25 = vld [vmem:[#allocation10 + $0x8] sm:$0xff] }
 0x209   :  { %v1398_v44 = vadd.f32 %v1390_v37, %v1346_v41  ;;  %v1399_v45 = vadd.f32 %v1391_v38, %v1359_v42 }
 0x20b   :  { %v2194_v46 = vmul.f32 -1.442695, %v1398_v44  ;;  %v2195_v47 = vmul.f32 -1.442695, %v1399_v45  ;;  %v2398_v44 = vld [vmem:[%s3187_s11] ss:$0 sm:$0xff] }
 0x20d   :  { %2415 = vpow2.f32 %v2194_v46  ;;  %v1371_v50 = vpop.f32.mrf.mxu2  ;;  %v1384_v51 = vpop.f32.mrf.mxu3 }
 0x20e   :  { %2417 = vpow2.f32 %v2195_v47  ;;  %v1385_v54 = vadd.f32 %v1384_v51, %v1172_v28  ;;  %v1347_v56 = vpop.f32.mrf.mxu0  ;;  %v1360_v52 = vpop.f32.mrf.mxu1  ;;  %v1372_v63 = vadd.f32 %v1371_v50, %v1159_v30 }
 0x210   :  { %v1401_v57 = vadd.f32 %v1393_v49, %v1385_v54  ;;  %v1400_v4 = vadd.f32 %v1392_v0, %v1372_v63 }
 0x212   :  { %v2196_v59 = vmul.f32 -1.442695, %v1401_v57 }
 0x213   :  { %v2416_v16 = vpop.eup %2415 }
 0x214   :  { %v2418_v60 = vpop.eup %2417  ;;  %v1405_v22 = vadd.f32 1.0, %v2416_v16  ;;  %2419 = vpow2.f32 %v2196_v59 }
 0x215   :  { %v1424_v61 = vadd.f32 1.0, %v2418_v60  ;;  %v1373_v62 = vpop.f32.mrf.mxu2  ;;  %v1386_v55 = vpop.f32.mrf.mxu3 }
 0x216   :  { %2421 = vrcp.f32 %v1405_v22  ;;  %v1417_v10 = vand.u32 2147483648, %v1405_v22  ;;  %v1415_v14 = vand.u32 2147483647, %v1405_v22  ;;  %vm1411_vm14 = vweird.f32 %v1405_v22 }
 0x217   :  { %2423 = vrcp.f32 %v1424_v61  ;;  %v1436_v11 = vand.u32 2147483648, %v1424_v61  ;;  %v1434_v17 = vand.u32 2147483647, %v1424_v61  ;;  %vm1430_vm15 = vweird.f32 %v1424_v61 }
 0x218   :  { %v1418_v20 = vor.u32 1.1754944e-38, %v1417_v10  ;;  %vm1416_vm2 = vcmp.eq.f32.partialorder %v1415_v14, 8.507059e+37 }
 0x219   :  { %v1437_v24 = vor.u32 1.1754944e-38, %v1436_v11  ;;  %vm1435_vm3 = vcmp.eq.f32.partialorder %v1434_v17, 8.507059e+37 }
 0x21a   :  { %v2420_v1 = vpop.eup %2419 }
 0x21b   :  { %v1444_v2 = vadd.f32 1.0, %v2420_v1 }
 0x21c   :  { %v2422_v3 = vpop.eup %2421 }
 0x21d   :  { %v2424_v5 = vpop.eup %2423  ;;  %v1407_v6 = vmul.f32 %v2422_v3, %v1405_v22  ;;  %2425 = vrcp.f32 %v1444_v2  ;;  %vm1412_vm12 = vweird.f32 %v2422_v3  ;;  %v1456_v36 = vand.u32 2147483648, %v1444_v2 }
 0x21e   :  { %v1426_v7 = vmul.f32 %v2424_v5, %v1424_v61  ;;  %2427 = vtanh.f32 %v1400_v4  ;;  %vm1431_vm13 = vweird.f32 %v2424_v5  ;;  %vm1413_vm0 = vmor %vm1411_vm14, %vm1412_vm12  ;;  %vm1450_vm5 = vweird.f32 %v1444_v2 }
 0x21f   :  { %v1408_v8 = vsub.f32 1.0, %v1407_v6  ;;  %vm1432_vm1 = vmor %vm1430_vm15, %vm1431_vm13  ;;  %v1454_v37 = vand.u32 2147483647, %v1444_v2  ;;  %v1457_v39 = vor.u32 1.1754944e-38, %v1456_v36 }
 0x220   :  { %v1427_v9 = vsub.f32 1.0, %v1426_v7 }
 0x221   :  { %v1409_v12 = vmul.f32 %v2422_v3, %v1408_v8  ;;  %vm1455_vm7 = vcmp.eq.f32.partialorder %v1454_v37, 8.507059e+37 }
 0x222   :  { %v1428_v15 = vmul.f32 %v2424_v5, %v1427_v9 }
 0x223   :  { %v2426_v18 = vpop.eup %2425  ;;  %v1410_v19 = vadd.f32 %v2422_v3, %v1409_v12 }
 0x224   :  { %v1429_v21 = vadd.f32 %v2424_v5, %v1428_v15  ;;  %v1446_v23 = vmul.f32 %v2426_v18, %v1444_v2  ;;  %v2428_v27 = vpop.eup %2427  ;;  %vm1451_vm4 = vweird.f32 %v2426_v18 }
 0x225   :  { %v1414_v26 = vsel %vm1413_vm0, %v2422_v3, %v1410_v19  ;;  %vm1452_vm6 = vmor %vm1450_vm5, %vm1451_vm4 }
 0x226   :  { %v1419_v28 = vsel %vm1416_vm2, %v1418_v20, %v1414_v26  ;;  %v1433_v29 = vsel %vm1432_vm1, %v2424_v5, %v1429_v21  ;;  %v1447_v30 = vsub.f32 1.0, %v1446_v23 }
 0x227   :  { %v1438_v31 = vsel %vm1435_vm3, %v1437_v24, %v1433_v29  ;;  %v1461_v32 = vmul.f32 %v2428_v27, %v1419_v28 }
 0x228   :  { %v1460_v13 = vmul.f32 %v1438_v31, %v897_v25  ;;  %v1448_v33 = vmul.f32 %v2426_v18, %v1447_v30 }
 0x22a   :  { %v1462_v34 = vadd.f32 %v1461_v32, %v1460_v13  ;;  %v1449_v35 = vadd.f32 %v2426_v18, %v1448_v33 }
 0x22c   :  { %2429 = vtanh.f32 %v1462_v34  ;;  %1468 = vst [vmem:[#allocation22 + $0x8] sm:$0xff] %v1462_v34  ;;  %v1453_v38 = vsel %vm1452_vm6, %v2426_v18, %v1449_v35 }
 0x22d   :  { %v1458_v41 = vsel %vm1455_vm7, %v1457_v39, %v1453_v38 }
 0x232   :  { %v2430_v40 = vpop.eup %2429 }
 0x233   :  { %v1464_v42 = vmul.f32 %v2430_v40, %v1458_v41 }
 0x235   :  { %v1471_v43 = vpack.c.bf16 %v1464_v42, %v1464_v42  ;;  %1466 = vst [vmem:[#allocation20 + $0x8] sm:$0xff] %v1464_v42 }
 0x236   :  { %1577 = dma.vmem_to_hbm [thread:$0]  %s1570_s20, 256, %s1572_s10, [#allocation21], %s2907_s0, %s2907_s0, %s2908_s22  }
 0x237   :  { %1548 = vmatmul.bf16.vlgmr.msra.gmra.mxu0 %v1471_v43  ;;  %1590 = dma.vmem_to_hbm [thread:$0]  %s1583_s29, 256, %s1585_s15, [#allocation21], %s2907_s0, %s2907_s0, %s2908_s22  }
 0x2b4   :  { %v1549_v45 = vpop.f32.mrf.mxu0 }
 0x2b5   :  { %v1550_v46 = vadd.f32 %v2398_v44, %v1549_v45 }
 0x2b7   :  { %1553 = vst [vmem:[#allocation19] sm:$0xff] %v1550_v46 }
 0x2b8   :  { %1564 = dma.vmem_to_hbm [thread:$0]  %s1560_s26, 128, %s1562_s4, [#allocation9]  }
 0x2bc   :  { %v1551_v47 = vpop.f32.mrf.mxu0 }
 0x2bd   :  { %2901 = dma.done.wait [#allocation9], 128  }
 0x2be   :  { %2902 = vsyncadd [#allocation9], 4294967168 }
 0x2bf   :  { %2903 = dma.done.wait [#allocation21], 512  }
 0x2c0   :  { %2904 = vsyncadd [#allocation21], 4294966784 }
 0x2c1   :  { %1603 = vsyncpa [#allocation8], 1 }
 0x2c2   :  { %1604 = vsyncpa [#allocation11], 1 }
 0x2c3   :  { %1605 = vsyncpa [#allocation14], 1 }
 0x2c4   :  { %1606 = vsyncpa [#allocation17], 1 }
 0x2c5   :  { %1607 = vsyncpa [#allocation9], 1 }
 0x2c6   :  { %1608 = vsyncpa [#allocation21], 1 }
 0x2c7   :  { %1609 = vsyncmov [#allocation4] }
 0x2ca   :  { %s1610_s11 = vpop.sfrf %1609 }
 0x2cb   :  { %p2229_p12 = scmp.ne.s32.totalorder %s1610_s11, 0 }
 0x2cd   :  { %1614 = shalt.err (%p2229_p12)  }
 0x2ce   :  { %1616 = vsyncmov [#allocation4 + $0x1] }
 0x2d1   :  { %s1617_s12 = vpop.sfrf %1616 }
 0x2d2   :  { %p2230_p13 = scmp.ne.s32.totalorder %s1617_s12, 0 }
 0x2d4   :  { %1621 = shalt.err (%p2230_p13)  }
 0x2d5   :  { %1623 = vsyncmov [#allocation4 + $0x2] }
 0x2d8   :  { %s1624_s14 = vpop.sfrf %1623 }
 0x2d9   :  { %p2231_p0 = scmp.ne.s32.totalorder %s1624_s14, 0 }
 0x2db   :  { %1628 = shalt.err (%p2231_p0)  }
 0x2dc   :  { %1630 = vsyncmov [#allocation4 + $0x3] }
 0x2df   :  { %s1631_s0 = vpop.sfrf %1630 }
 0x2e0   :  { %p2232_p1 = scmp.ne.s32.totalorder %s1631_s0, 0 }
 0x2e2   :  { %1635 = shalt.err (%p2232_p1)  }
 0x2e3   :  { %1637 = vsyncmov [#allocation4 + $0x4] }
 0x2e6   :  { %s1638_s22 = vpop.sfrf %1637 }
 0x2e7   :  { %p2233_p2 = scmp.ne.s32.totalorder %s1638_s22, 0 }
 0x2e9   :  { %1642 = shalt.err (%p2233_p2)  }
 0x2ea   :  { %1644 = vsyncmov [#allocation4 + $0x5] }
 0x2ed   :  { %s1645_s24 = vpop.sfrf %1644 }
 0x2ee   :  { %p2234_p3 = scmp.ne.s32.totalorder %s1645_s24, 0 }
 0x2f0   :  { %1649 = shalt.err (%p2234_p3)  }
 0x2f1   :  { %1651 = vsyncmov [#allocation4 + $0x6] }
 0x2f4   :  { %s1652_s23 = vpop.sfrf %1651 }
 0x2f5   :  { %p2235_p4 = scmp.ne.s32.totalorder %s1652_s23, 0 }
 0x2f7   :  { %1656 = shalt.err (%p2235_p4)  }
 0x2f8   :  { %1658 = vsyncmov [#allocation4 + $0x7] }
 0x2fb   :  { %s1659_s28 = vpop.sfrf %1658 }
 0x2fc   :  { %p2236_p5 = scmp.ne.s32.totalorder %s1659_s28, 0 }
 0x2fe   :  { %1663 = shalt.err (%p2236_p5)  }

</bundles_post_ra>
